<compile_context>
chip_gen: v7x
topology: tpu7x:2x2x1
jax: 0.10.0
libtpu: 0.0.40
codegen_flags: <defaults>
</compile_context>

<pallas_src>
import functools

import jax
import jax.numpy as jnp
from jax.experimental import pallas as pl
from jax.experimental.pallas import tpu as pltpu


def _round_up(x, m):
    return (x + m - 1) // m * m


def _largest_divisor_at_most(n, limit):
    limit = max(1, min(n, limit))
    for d in range(limit, 0, -1):
        if n % d == 0:
            return d
    return 1


def _conv_bn_lrelu_kernel(a_ref, b1_ref, b2_ref, w_ref, scale_ref, shift_ref,
                          o_ref, xs_ref, acc_ref,
                          *, TH, W, Wp, negative_slope, compute_dtype):
    """Fused 3x3 conv + per-channel affine (bias + BN eval) + LeakyReLU.

    a_ref     : (1, TH, Wp, Cin_p)   main rows of the zero-padded NHWC input
    b1_ref    : (1, 1,  Wp, Cin_p)   halo row  r*TH + TH
    b2_ref    : (1, 1,  Wp, Cin_p)   halo row  r*TH + TH + 1
    w_ref     : (9, Cin_p, Cout_p)   conv weights, tap index = kh*3 + kw
    scale_ref : (1, Cout_p)          gamma / sqrt(var + eps)
    shift_ref : (1, Cout_p)          (conv_bias - mean) * scale + beta
    o_ref     : (1, TH, W, Cout_p)   output tile (NHWC, channel-padded)
    xs_ref    : ((TH+3)*Wp, Cin_p)   flattened halo'd input tile (compute dtype)
    acc_ref   : (TH*Wp, Cout_p)      f32 accumulator (VMEM)
    """
    cin_p = w_ref.shape[1]
    cout_p = w_ref.shape[2]
    M = TH * Wp

    # ---- assemble the (TH+2)-row halo'd tile into one flat scratch ---------
    # Flat row q = p*Wp + c of xs holds padded-input pixel (row p, col c).
    # Keeping the width halo inside the flattened M dim makes every 3x3 tap
    # below a *contiguous* slice at static offset kh*Wp + kw -- no strided
    # per-tap gather/reshape copies are materialized.
    xs_ref[0:M, :] = a_ref[...].reshape(M, cin_p).astype(compute_dtype)
    xs_ref[M:M + Wp, :] = b1_ref[...].reshape(Wp, cin_p).astype(compute_dtype)
    xs_ref[M + Wp:M + 2 * Wp, :] = (
        b2_ref[...].reshape(Wp, cin_p).astype(compute_dtype))
    # Slack row: taps with kw > 0 read 2 elements past the halo (those rows of
    # the product land in discarded padding columns); keep the slack zeroed.
    xs_ref[M + 2 * Wp:M + 3 * Wp, :] = jnp.zeros((Wp, cin_p), compute_dtype)

    # ---- 3x3 conv: 9 offset-slice MXU matmuls, f32 accumulation in VMEM ----
    for kh in range(3):
        part = None
        for kw in range(3):
            off = kh * Wp + kw
            d = jnp.dot(xs_ref[off:off + M, :], w_ref[kh * 3 + kw],
                        preferred_element_type=jnp.float32)
            part = d if part is None else part + d
        if kh == 0:
            acc_ref[...] = part          # one accumulator RMW per kh group
        else:
            acc_ref[...] += part

    # ---- fused conv-bias + BatchNorm(eval) + LeakyReLU epilogue ------------
    y = acc_ref[...] * scale_ref[...] + shift_ref[...]
    y = jnp.where(y >= 0, y, negative_slope * y)
    # Drop the width-halo columns and store the lane-dense NHWC tile.
    o_ref[0] = y.reshape(TH, Wp, cout_p)[:, :W, :].astype(o_ref.dtype)


def conv_dropout_norm_nonlin_nhwc(x_nhwc, weight, bias, gamma, beta,
                                  running_mean, running_var, *,
                                  eps=1e-5, negative_slope=0.01,
                                  compute_dtype=jnp.bfloat16,
                                  max_rows_per_tile=None):
    """NHWC (channels-last) fast path. Returns (N, H, W, Cout)."""
    N, H, W, Cin = x_nhwc.shape
    Cout = weight.shape[0]

    cin_p = _round_up(Cin, 128)          # lane-dense input channels
    cout_p = _round_up(Cout, 128)        # lane-dense (unmasked) output stores
    Wp = _round_up(W + 2, 8)             # width + halo, sublane aligned
    cdt_size = jnp.dtype(compute_dtype).itemsize
    in_size = jnp.dtype(x_nhwc.dtype).itemsize

    # ---- pick the row tile so the working set fits comfortably in VMEM -----
    # Budget sized for v7x's 64 MiB VMEM (v5e/v6e have 128 MiB).
    per_row_bytes = Wp * (cin_p * (2 * in_size + cdt_size)    # input blk + scratch
                          + cout_p * (4 + 2 * in_size))       # f32 acc + out blk
    target = max(1, (24 << 20) // max(per_row_bytes, 1))
    if max_rows_per_tile is not None:
        target = min(target, max_rows_per_tile)
    TH = _largest_divisor_at_most(H, target)
    n_row_tiles = H // TH

    # ---- host-side glue: zero halo + channel padding + parameter folding ---
    xp = jnp.pad(x_nhwc, ((0, 0), (1, 1), (1, Wp - W - 1), (0, cin_p - Cin)))
    # PyTorch OIHW -> (kh, kw, Cin, Cout) -> channel-padded (9, Cin_p, Cout_p)
    w = jnp.transpose(weight, (2, 3, 1, 0))
    w = jnp.pad(w, ((0, 0), (0, 0), (0, cin_p - Cin), (0, cout_p - Cout)))
    w = w.reshape(9, cin_p, cout_p).astype(compute_dtype)

    s = gamma / jnp.sqrt(running_var + eps)
    scale = jnp.pad(s, (0, cout_p - Cout)).reshape(1, cout_p).astype(jnp.float32)
    shift = jnp.pad((bias - running_mean) * s + beta,
                    (0, cout_p - Cout)).reshape(1, cout_p).astype(jnp.float32)

    kernel = functools.partial(_conv_bn_lrelu_kernel, TH=TH, W=W, Wp=Wp,
                               negative_slope=negative_slope,
                               compute_dtype=compute_dtype)

    # Explicit VMEM budget: 2x (double buffer) every pipelined block + scratch.
    block_bytes = ((TH + 2) * Wp * cin_p * in_size
                   + 9 * cin_p * cout_p * cdt_size
                   + 2 * cout_p * 4
                   + TH * W * cout_p * in_size)
    scratch_bytes = (TH + 3) * Wp * cin_p * cdt_size + TH * Wp * cout_p * 4
    vmem_limit = int(min(max(2 * (2 * block_bytes + scratch_bytes), 32 << 20),
                         100 << 20))

    cost = pl.CostEstimate(
        flops=2 * 9 * N * H * Wp * cin_p * cout_p,
        transcendentals=0,
        bytes_accessed=(xp.size * in_size + w.size * cdt_size
                        + N * H * W * cout_p * in_size))

    out = pl.pallas_call(
        kernel,
        grid=(N, n_row_tiles),
        in_specs=[
            # main TH rows of the padded image for this row tile
            pl.BlockSpec((1, TH, Wp, cin_p), lambda n, r: (n, r, 0, 0)),
            # 2-row halo, expressed via index_map as two 1-row blocks
            pl.BlockSpec((1, 1, Wp, cin_p),
                         lambda n, r: (n, r * TH + TH, 0, 0)),
            pl.BlockSpec((1, 1, Wp, cin_p),
                         lambda n, r: (n, r * TH + TH + 1, 0, 0)),
            # weights / folded affine stay resident (constant block index)
            pl.BlockSpec((9, cin_p, cout_p), lambda n, r: (0, 0, 0)),
            pl.BlockSpec((1, cout_p), lambda n, r: (0, 0)),
            pl.BlockSpec((1, cout_p), lambda n, r: (0, 0)),
        ],
        out_specs=pl.BlockSpec((1, TH, W, cout_p), lambda n, r: (n, r, 0, 0)),
        out_shape=jax.ShapeDtypeStruct((N, H, W, cout_p), x_nhwc.dtype),
        scratch_shapes=[
            pltpu.VMEM(((TH + 3) * Wp, cin_p), compute_dtype),
            pltpu.VMEM((TH * Wp, cout_p), jnp.float32),
        ],
        compiler_params=pltpu.CompilerParams(
            dimension_semantics=("parallel", "parallel"),
            vmem_limit_bytes=vmem_limit),
        cost_estimate=cost,
    )(xp, xp, xp, w, scale, shift)

    return out[..., :Cout]


def conv_dropout_norm_nonlin(x_nchw, weight, bias, gamma, beta,
                             running_mean, running_var, *,
                             eps=1e-5, negative_slope=0.01,
                             compute_dtype=jnp.bfloat16,
                             max_rows_per_tile=None):
    """PyTorch-convention (NCHW) entry point; NHWC is the canonical fast path."""
    y = conv_dropout_norm_nonlin_nhwc(
        jnp.transpose(x_nchw, (0, 2, 3, 1)), weight, bias, gamma, beta,
        running_mean, running_var, eps=eps, negative_slope=negative_slope,
        compute_dtype=compute_dtype, max_rows_per_tile=max_rows_per_tile)
    return jnp.transpose(y, (0, 3, 1, 2))


def _reference_forward(x, weight, bias, gamma, beta, rm, rv,
                       eps=1e-5, negative_slope=0.01):
    """Pure-JAX reference mirroring the PyTorch module (eval mode)."""
    y = jax.lax.conv_general_dilated(
        x, weight, window_strides=(1, 1), padding=((1, 1), (1, 1)),
        dimension_numbers=("NCHW", "OIHW", "NCHW"))
    y = y + bias.reshape(1, -1, 1, 1)
    # dropout (eval) = identity
    y = (y - rm.reshape(1, -1, 1, 1)) / jnp.sqrt(rv.reshape(1, -1, 1, 1) + eps)
    y = y * gamma.reshape(1, -1, 1, 1) + beta.reshape(1, -1, 1, 1)
    return jnp.where(y >= 0, y, negative_slope * y)


if __name__ == "__main__":
    N, Cin, Cout, H, W = 2, 4, 8, 16, 16

    key = jax.random.PRNGKey(0)
    ks = jax.random.split(key, 7)
    x = jax.random.normal(ks[0], (N, Cin, H, W), jnp.float32)
    weight = 0.1 * jax.random.normal(ks[1], (Cout, Cin, 3, 3), jnp.float32)
    bias = 0.1 * jax.random.normal(ks[2], (Cout,), jnp.float32)
    gamma = 1.0 + 0.1 * jax.random.normal(ks[3], (Cout,), jnp.float32)
    beta = 0.1 * jax.random.normal(ks[4], (Cout,), jnp.float32)
    running_mean = 0.1 * jax.random.normal(ks[5], (Cout,), jnp.float32)
    running_var = jax.random.uniform(ks[6], (Cout,), jnp.float32,
                                     minval=0.5, maxval=1.5)

    ref = jax.block_until_ready(_reference_forward(
        x, weight, bias, gamma, beta, running_mean, running_var))

    # f32 compute path: tight numerical check.  max_rows_per_tile=8 forces a
    # (N, 2) grid so the multi-row-tile halo path is actually exercised.
    out_f32 = conv_dropout_norm_nonlin(
        x, weight, bias, gamma, beta, running_mean, running_var,
        compute_dtype=jnp.float32, max_rows_per_tile=8)
    out_f32 = jax.block_until_ready(out_f32)
    assert out_f32.shape == (N, Cout, H, W), out_f32.shape
    err32 = float(jnp.max(jnp.abs(out_f32 - ref)))
    assert jnp.allclose(out_f32, ref, rtol=1e-4, atol=1e-4), err32

    # bf16 matmul operands (default fast path), f32 accumulation: loose check.
    out_bf16 = conv_dropout_norm_nonlin(
        x, weight, bias, gamma, beta, running_mean, running_var,
        max_rows_per_tile=8)
    out_bf16 = jax.block_until_ready(out_bf16)
    assert out_bf16.shape == (N, Cout, H, W), out_bf16.shape
    err16 = float(jnp.max(jnp.abs(out_bf16 - ref)))
    assert jnp.allclose(out_bf16, ref, rtol=5e-2, atol=1e-1), err16

    print("KERNEL_OK")
</pallas_src>

<mosaic_0001>
module attributes {stable_mosaic.version = 11 : i64} {
  func.func @_conv_bn_lrelu_kernel(%arg0: i32, %arg1: i32, %arg2: memref<1x8x24x128xf32, #tpu.memory_space<vmem>>, %arg3: memref<1x1x24x128xf32, #tpu.memory_space<vmem>>, %arg4: memref<1x1x24x128xf32, #tpu.memory_space<vmem>>, %arg5: memref<9x128x128xf32, #tpu.memory_space<vmem>>, %arg6: memref<1x128xf32, #tpu.memory_space<vmem>>, %arg7: memref<1x128xf32, #tpu.memory_space<vmem>>, %arg8: memref<1x8x16x128xf32, #tpu.memory_space<vmem>>, %arg9: memref<264x128xf32, #tpu.memory_space<vmem>>, %arg10: memref<192x128xf32, #tpu.memory_space<vmem>>) attributes {dimension_semantics = [#tpu.dimension_semantics<parallel>, #tpu.dimension_semantics<parallel>], iteration_bounds = array<i64: 2, 2>, scalar_prefetch = 0 : i64, scratch_operands = 2 : i64, tpu.core_type = #tpu.core_type<tc>, window_params = [{transform_indices = @transform_0, window_bounds = array<i64: 1, 8, 24, 128>}, {transform_indices = @transform_1, window_bounds = array<i64: 1, 1, 24, 128>}, {transform_indices = @transform_2, window_bounds = array<i64: 1, 1, 24, 128>}, {pipeline_mode = #tpu.pipeline_mode<synchronous>, transform_indices = @transform_3, window_bounds = array<i64: 9, 128, 128>}, {pipeline_mode = #tpu.pipeline_mode<synchronous>, transform_indices = @transform_4, window_bounds = array<i64: 1, 128>}, {pipeline_mode = #tpu.pipeline_mode<synchronous>, transform_indices = @transform_5, window_bounds = array<i64: 1, 128>}, {transform_indices = @transform_6, window_bounds = array<i64: 1, 8, 16, 128>}]} {
    %c0 = arith.constant 0 : index
    %c0_0 = arith.constant 0 : index
    %c0_1 = arith.constant 0 : index
    %c0_2 = arith.constant 0 : index
    %0 = vector.load %arg2[%c0, %c0_0, %c0_1, %c0_2] : memref<1x8x24x128xf32, #tpu.memory_space<vmem>>, vector<1x8x24x128xf32>
    %1 = vector.shape_cast %0 : vector<1x8x24x128xf32> to vector<192x128xf32>
    %c0_3 = arith.constant 0 : index
    %c0_4 = arith.constant 0 : index
    %2 = vector.load %arg9[%c0_3, %c0_4] : memref<264x128xf32, #tpu.memory_space<vmem>>, vector<192x128xf32>
    tpu.vector_store %arg9[%c0_3, %c0_4], %1 {strides = array<i32>} : memref<264x128xf32, #tpu.memory_space<vmem>>, vector<192x128xf32>,
    %c0_5 = arith.constant 0 : index
    %c0_6 = arith.constant 0 : index
    %c0_7 = arith.constant 0 : index
    %c0_8 = arith.constant 0 : index
    %3 = vector.load %arg3[%c0_5, %c0_6, %c0_7, %c0_8] : memref<1x1x24x128xf32, #tpu.memory_space<vmem>>, vector<1x1x24x128xf32>
    %4 = vector.shape_cast %3 : vector<1x1x24x128xf32> to vector<24x128xf32>
    %c192 = arith.constant 192 : index
    %c0_9 = arith.constant 0 : index
    %5 = vector.load %arg9[%c192, %c0_9] : memref<264x128xf32, #tpu.memory_space<vmem>>, vector<24x128xf32>
    tpu.vector_store %arg9[%c192, %c0_9], %4 {strides = array<i32>} : memref<264x128xf32, #tpu.memory_space<vmem>>, vector<24x128xf32>,
    %c0_10 = arith.constant 0 : index
    %c0_11 = arith.constant 0 : index
    %c0_12 = arith.constant 0 : index
    %c0_13 = arith.constant 0 : index
    %6 = vector.load %arg4[%c0_10, %c0_11, %c0_12, %c0_13] : memref<1x1x24x128xf32, #tpu.memory_space<vmem>>, vector<1x1x24x128xf32>
    %7 = vector.shape_cast %6 : vector<1x1x24x128xf32> to vector<24x128xf32>
    %c216 = arith.constant 216 : index
    %c0_14 = arith.constant 0 : index
    %8 = vector.load %arg9[%c216, %c0_14] : memref<264x128xf32, #tpu.memory_space<vmem>>, vector<24x128xf32>
    tpu.vector_store %arg9[%c216, %c0_14], %7 {strides = array<i32>} : memref<264x128xf32, #tpu.memory_space<vmem>>, vector<24x128xf32>,
    %cst = arith.constant 0.000000e+00 : f32
    %9 = vector.broadcast %cst : f32 to vector<24x128xf32>
    %c240 = arith.constant 240 : index
    %c0_15 = arith.constant 0 : index
    %10 = vector.load %arg9[%c240, %c0_15] : memref<264x128xf32, #tpu.memory_space<vmem>>, vector<24x128xf32>
    tpu.vector_store %arg9[%c240, %c0_15], %9 {strides = array<i32>} : memref<264x128xf32, #tpu.memory_space<vmem>>, vector<24x128xf32>,
    %c0_16 = arith.constant 0 : index
    %c0_17 = arith.constant 0 : index
    %11 = vector.load %arg9[%c0_16, %c0_17] : memref<264x128xf32, #tpu.memory_space<vmem>>, vector<192x128xf32>
    %c0_18 = arith.constant 0 : index
    %c0_19 = arith.constant 0 : index
    %c0_20 = arith.constant 0 : index
    %12 = vector.load %arg5[%c0_18, %c0_19, %c0_20] : memref<9x128x128xf32, #tpu.memory_space<vmem>>, vector<1x128x128xf32>
    %13 = vector.shape_cast %12 : vector<1x128x128xf32> to vector<128x128xf32>
    %cst_21 = arith.constant dense<0.000000e+00> : vector<192x128xf32>
    %14 = tpu.matmul %11, %13, %cst_21 {dimension_numbers = #tpu.dot_dimension_numbers<[1], [0], [0], [1], [0, 0, 1, 1], [], []>} : vector<192x128xf32>, vector<128x128xf32>, vector<192x128xf32> -> vector<192x128xf32>
    %c1 = arith.constant 1 : index
    %c0_22 = arith.constant 0 : index
    %15 = vector.load %arg9[%c1, %c0_22] : memref<264x128xf32, #tpu.memory_space<vmem>>, vector<192x128xf32>
    %c1_23 = arith.constant 1 : index
    %c0_24 = arith.constant 0 : index
    %c0_25 = arith.constant 0 : index
    %16 = vector.load %arg5[%c1_23, %c0_24, %c0_25] : memref<9x128x128xf32, #tpu.memory_space<vmem>>, vector<1x128x128xf32>
    %17 = vector.shape_cast %16 : vector<1x128x128xf32> to vector<128x128xf32>
    %cst_26 = arith.constant dense<0.000000e+00> : vector<192x128xf32>
    %18 = tpu.matmul %15, %17, %cst_26 {dimension_numbers = #tpu.dot_dimension_numbers<[1], [0], [0], [1], [0, 0, 1, 1], [], []>} : vector<192x128xf32>, vector<128x128xf32>, vector<192x128xf32> -> vector<192x128xf32>
    %19 = arith.addf %14, %18 : vector<192x128xf32>
    %c2 = arith.constant 2 : index
    %c0_27 = arith.constant 0 : index
    %20 = vector.load %arg9[%c2, %c0_27] : memref<264x128xf32, #tpu.memory_space<vmem>>, vector<192x128xf32>
    %c2_28 = arith.constant 2 : index
    %c0_29 = arith.constant 0 : index
    %c0_30 = arith.constant 0 : index
    %21 = vector.load %arg5[%c2_28, %c0_29, %c0_30] : memref<9x128x128xf32, #tpu.memory_space<vmem>>, vector<1x128x128xf32>
    %22 = vector.shape_cast %21 : vector<1x128x128xf32> to vector<128x128xf32>
    %cst_31 = arith.constant dense<0.000000e+00> : vector<192x128xf32>
    %23 = tpu.matmul %20, %22, %cst_31 {dimension_numbers = #tpu.dot_dimension_numbers<[1], [0], [0], [1], [0, 0, 1, 1], [], []>} : vector<192x128xf32>, vector<128x128xf32>, vector<192x128xf32> -> vector<192x128xf32>
    %24 = arith.addf %19, %23 : vector<192x128xf32>
    %c0_32 = arith.constant 0 : index
    %c0_33 = arith.constant 0 : index
    %25 = vector.load %arg10[%c0_32, %c0_33] : memref<192x128xf32, #tpu.memory_space<vmem>>, vector<192x128xf32>
    tpu.vector_store %arg10[%c0_32, %c0_33], %24 {strides = array<i32>} : memref<192x128xf32, #tpu.memory_space<vmem>>, vector<192x128xf32>,
    %c24 = arith.constant 24 : index
    %c0_34 = arith.constant 0 : index
    %26 = vector.load %arg9[%c24, %c0_34] : memref<264x128xf32, #tpu.memory_space<vmem>>, vector<192x128xf32>
    %c3 = arith.constant 3 : index
    %c0_35 = arith.constant 0 : index
    %c0_36 = arith.constant 0 : index
    %27 = vector.load %arg5[%c3, %c0_35, %c0_36] : memref<9x128x128xf32, #tpu.memory_space<vmem>>, vector<1x128x128xf32>
    %28 = vector.shape_cast %27 : vector<1x128x128xf32> to vector<128x128xf32>
    %cst_37 = arith.constant dense<0.000000e+00> : vector<192x128xf32>
    %29 = tpu.matmul %26, %28, %cst_37 {dimension_numbers = #tpu.dot_dimension_numbers<[1], [0], [0], [1], [0, 0, 1, 1], [], []>} : vector<192x128xf32>, vector<128x128xf32>, vector<192x128xf32> -> vector<192x128xf32>
    %c25 = arith.constant 25 : index
    %c0_38 = arith.constant 0 : index
    %30 = vector.load %arg9[%c25, %c0_38] : memref<264x128xf32, #tpu.memory_space<vmem>>, vector<192x128xf32>
    %c4 = arith.constant 4 : index
    %c0_39 = arith.constant 0 : index
    %c0_40 = arith.constant 0 : index
    %31 = vector.load %arg5[%c4, %c0_39, %c0_40] : memref<9x128x128xf32, #tpu.memory_space<vmem>>, vector<1x128x128xf32>
    %32 = vector.shape_cast %31 : vector<1x128x128xf32> to vector<128x128xf32>
    %cst_41 = arith.constant dense<0.000000e+00> : vector<192x128xf32>
    %33 = tpu.matmul %30, %32, %cst_41 {dimension_numbers = #tpu.dot_dimension_numbers<[1], [0], [0], [1], [0, 0, 1, 1], [], []>} : vector<192x128xf32>, vector<128x128xf32>, vector<192x128xf32> -> vector<192x128xf32>
    %34 = arith.addf %29, %33 : vector<192x128xf32>
    %c26 = arith.constant 26 : index
    %c0_42 = arith.constant 0 : index
    %35 = vector.load %arg9[%c26, %c0_42] : memref<264x128xf32, #tpu.memory_space<vmem>>, vector<192x128xf32>
    %c5 = arith.constant 5 : index
    %c0_43 = arith.constant 0 : index
    %c0_44 = arith.constant 0 : index
    %36 = vector.load %arg5[%c5, %c0_43, %c0_44] : memref<9x128x128xf32, #tpu.memory_space<vmem>>, vector<1x128x128xf32>
    %37 = vector.shape_cast %36 : vector<1x128x128xf32> to vector<128x128xf32>
    %cst_45 = arith.constant dense<0.000000e+00> : vector<192x128xf32>
    %38 = tpu.matmul %35, %37, %cst_45 {dimension_numbers = #tpu.dot_dimension_numbers<[1], [0], [0], [1], [0, 0, 1, 1], [], []>} : vector<192x128xf32>, vector<128x128xf32>, vector<192x128xf32> -> vector<192x128xf32>
    %39 = arith.addf %34, %38 : vector<192x128xf32>
    %c0_46 = arith.constant 0 : index
    %c0_47 = arith.constant 0 : index
    %40 = vector.load %arg10[%c0_46, %c0_47] : memref<192x128xf32, #tpu.memory_space<vmem>>, vector<192x128xf32>
    %41 = arith.addf %40, %39 : vector<192x128xf32>
    %c0_48 = arith.constant 0 : index
    %c0_49 = arith.constant 0 : index
    %42 = vector.load %arg10[%c0_48, %c0_49] : memref<192x128xf32, #tpu.memory_space<vmem>>, vector<192x128xf32>
    tpu.vector_store %arg10[%c0_48, %c0_49], %41 {strides = array<i32>} : memref<192x128xf32, #tpu.memory_space<vmem>>, vector<192x128xf32>,
    %c48 = arith.constant 48 : index
    %c0_50 = arith.constant 0 : index
    %43 = vector.load %arg9[%c48, %c0_50] : memref<264x128xf32, #tpu.memory_space<vmem>>, vector<192x128xf32>
    %c6 = arith.constant 6 : index
    %c0_51 = arith.constant 0 : index
    %c0_52 = arith.constant 0 : index
    %44 = vector.load %arg5[%c6, %c0_51, %c0_52] : memref<9x128x128xf32, #tpu.memory_space<vmem>>, vector<1x128x128xf32>
    %45 = vector.shape_cast %44 : vector<1x128x128xf32> to vector<128x128xf32>
    %cst_53 = arith.constant dense<0.000000e+00> : vector<192x128xf32>
    %46 = tpu.matmul %43, %45, %cst_53 {dimension_numbers = #tpu.dot_dimension_numbers<[1], [0], [0], [1], [0, 0, 1, 1], [], []>} : vector<192x128xf32>, vector<128x128xf32>, vector<192x128xf32> -> vector<192x128xf32>
    %c49 = arith.constant 49 : index
    %c0_54 = arith.constant 0 : index
    %47 = vector.load %arg9[%c49, %c0_54] : memref<264x128xf32, #tpu.memory_space<vmem>>, vector<192x128xf32>
    %c7 = arith.constant 7 : index
    %c0_55 = arith.constant 0 : index
    %c0_56 = arith.constant 0 : index
    %48 = vector.load %arg5[%c7, %c0_55, %c0_56] : memref<9x128x128xf32, #tpu.memory_space<vmem>>, vector<1x128x128xf32>
    %49 = vector.shape_cast %48 : vector<1x128x128xf32> to vector<128x128xf32>
    %cst_57 = arith.constant dense<0.000000e+00> : vector<192x128xf32>
    %50 = tpu.matmul %47, %49, %cst_57 {dimension_numbers = #tpu.dot_dimension_numbers<[1], [0], [0], [1], [0, 0, 1, 1], [], []>} : vector<192x128xf32>, vector<128x128xf32>, vector<192x128xf32> -> vector<192x128xf32>
    %51 = arith.addf %46, %50 : vector<192x128xf32>
    %c50 = arith.constant 50 : index
    %c0_58 = arith.constant 0 : index
    %52 = vector.load %arg9[%c50, %c0_58] : memref<264x128xf32, #tpu.memory_space<vmem>>, vector<192x128xf32>
    %c8 = arith.constant 8 : index
    %c0_59 = arith.constant 0 : index
    %c0_60 = arith.constant 0 : index
    %53 = vector.load %arg5[%c8, %c0_59, %c0_60] : memref<9x128x128xf32, #tpu.memory_space<vmem>>, vector<1x128x128xf32>
    %54 = vector.shape_cast %53 : vector<1x128x128xf32> to vector<128x128xf32>
    %cst_61 = arith.constant dense<0.000000e+00> : vector<192x128xf32>
    %55 = tpu.matmul %52, %54, %cst_61 {dimension_numbers = #tpu.dot_dimension_numbers<[1], [0], [0], [1], [0, 0, 1, 1], [], []>} : vector<192x128xf32>, vector<128x128xf32>, vector<192x128xf32> -> vector<192x128xf32>
    %56 = arith.addf %51, %55 : vector<192x128xf32>
    %c0_62 = arith.constant 0 : index
    %c0_63 = arith.constant 0 : index
    %57 = vector.load %arg10[%c0_62, %c0_63] : memref<192x128xf32, #tpu.memory_space<vmem>>, vector<192x128xf32>
    %58 = arith.addf %57, %56 : vector<192x128xf32>
    %c0_64 = arith.constant 0 : index
    %c0_65 = arith.constant 0 : index
    %59 = vector.load %arg10[%c0_64, %c0_65] : memref<192x128xf32, #tpu.memory_space<vmem>>, vector<192x128xf32>
    tpu.vector_store %arg10[%c0_64, %c0_65], %58 {strides = array<i32>} : memref<192x128xf32, #tpu.memory_space<vmem>>, vector<192x128xf32>,
    %c0_66 = arith.constant 0 : index
    %c0_67 = arith.constant 0 : index
    %60 = vector.load %arg10[%c0_66, %c0_67] : memref<192x128xf32, #tpu.memory_space<vmem>>, vector<192x128xf32>
    %c0_68 = arith.constant 0 : index
    %c0_69 = arith.constant 0 : index
    %61 = vector.load %arg6[%c0_68, %c0_69] : memref<1x128xf32, #tpu.memory_space<vmem>>, vector<1x128xf32>
    %62 = vector.broadcast %61 : vector<1x128xf32> to vector<192x128xf32>
    %63 = arith.mulf %60, %62 : vector<192x128xf32>
    %c0_70 = arith.constant 0 : index
    %c0_71 = arith.constant 0 : index
    %64 = vector.load %arg7[%c0_70, %c0_71] : memref<1x128xf32, #tpu.memory_space<vmem>>, vector<1x128xf32>
    %65 = vector.broadcast %64 : vector<1x128xf32> to vector<192x128xf32>
    %66 = arith.addf %63, %65 : vector<192x128xf32>
    %cst_72 = arith.constant 0.000000e+00 : f32
    %67 = vector.broadcast %cst_72 : f32 to vector<192x128xf32>
    %68 = arith.cmpf oge, %66, %67 : vector<192x128xf32>
    %cst_73 = arith.constant 0.00999999977 : f32
    %69 = vector.broadcast %cst_73 : f32 to vector<192x128xf32>
    %70 = arith.mulf %69, %66 : vector<192x128xf32>
    %71 = arith.select %68, %66, %70 : vector<192x128xi1>, vector<192x128xf32>
    %72 = vector.shape_cast %71 : vector<192x128xf32> to vector<8x24x128xf32>
    %73 = vector.extract_strided_slice %72 {offsets = [0, 0, 0], sizes = [8, 16, 128], strides = [1, 1, 1]} : vector<8x24x128xf32> to vector<8x16x128xf32>
    %c0_74 = arith.constant 0 : index
    %c0_75 = arith.constant 0 : index
    %c0_76 = arith.constant 0 : index
    %c0_77 = arith.constant 0 : index
    %74 = vector.load %arg8[%c0_74, %c0_75, %c0_76, %c0_77] : memref<1x8x16x128xf32, #tpu.memory_space<vmem>>, vector<1x8x16x128xf32>
    %75 = vector.shape_cast %74 : vector<1x8x16x128xf32> to vector<8x16x128xf32>
    %76 = vector.shape_cast %73 : vector<8x16x128xf32> to vector<1x8x16x128xf32>
    tpu.vector_store %arg8[%c0_74, %c0_75, %c0_76, %c0_77], %76 {strides = array<i32>} : memref<1x8x16x128xf32, #tpu.memory_space<vmem>>, vector<1x8x16x128xf32>,
    return
  }
  func.func @transform_0(%arg0: i32, %arg1: i32) -> (i32, i32, i32, i32) {
    %c0_i32 = arith.constant 0 : i32
    %c0_i32_0 = arith.constant 0 : i32
    %c0_i32_1 = arith.constant 0 : i32
    return %arg0, %arg1, %c0_i32, %c0_i32_0 : i32, i32, i32, i32
  }
  func.func @transform_1(%arg0: i32, %arg1: i32) -> (i32, i32, i32, i32) {
    %c8_i32 = arith.constant 8 : i32
    %0 = arith.muli %arg1, %c8_i32 : i32
    %c8_i32_0 = arith.constant 8 : i32
    %1 = arith.addi %0, %c8_i32_0 : i32
    %c0_i32 = arith.constant 0 : i32
    %c0_i32_1 = arith.constant 0 : i32
    %c0_i32_2 = arith.constant 0 : i32
    return %arg0, %1, %c0_i32, %c0_i32_1 : i32, i32, i32, i32
  }
  func.func @transform_2(%arg0: i32, %arg1: i32) -> (i32, i32, i32, i32) {
    %c8_i32 = arith.constant 8 : i32
    %0 = arith.muli %arg1, %c8_i32 : i32
    %c8_i32_0 = arith.constant 8 : i32
    %1 = arith.addi %0, %c8_i32_0 : i32
    %c1_i32 = arith.constant 1 : i32
    %2 = arith.addi %1, %c1_i32 : i32
    %c0_i32 = arith.constant 0 : i32
    %c0_i32_1 = arith.constant 0 : i32
    %c0_i32_2 = arith.constant 0 : i32
    return %arg0, %2, %c0_i32, %c0_i32_1 : i32, i32, i32, i32
  }
  func.func @transform_3(%arg0: i32, %arg1: i32) -> (i32, i32, i32) {
    %c0_i32 = arith.constant 0 : i32
    %c0_i32_0 = arith.constant 0 : i32
    %c0_i32_1 = arith.constant 0 : i32
    %c0_i32_2 = arith.constant 0 : i32
    return %c0_i32, %c0_i32_0, %c0_i32_1 : i32, i32, i32
  }
  func.func @transform_4(%arg0: i32, %arg1: i32) -> (i32, i32) {
    %c0_i32 = arith.constant 0 : i32
    %c0_i32_0 = arith.constant 0 : i32
    %c0_i32_1 = arith.constant 0 : i32
    return %c0_i32, %c0_i32_0 : i32, i32
  }
  func.func @transform_5(%arg0: i32, %arg1: i32) -> (i32, i32) {
    %c0_i32 = arith.constant 0 : i32
    %c0_i32_0 = arith.constant 0 : i32
    %c0_i32_1 = arith.constant 0 : i32
    return %c0_i32, %c0_i32_0 : i32, i32
  }
  func.func @transform_6(%arg0: i32, %arg1: i32) -> (i32, i32, i32, i32) {
    %c0_i32 = arith.constant 0 : i32
    %c0_i32_0 = arith.constant 0 : i32
    %c0_i32_1 = arith.constant 0 : i32
    return %arg0, %arg1, %c0_i32, %c0_i32_0 : i32, i32, i32, i32
  }
}

</mosaic_0001>

<bundles_post_ra>
// kernel: tpu_custom_call.1
= control target key start
LH: loop header
LB: loop body
LE: loop exit
PB: predicated region body
PF: predicated region fallthrough
CT: control target
= control target key end

     0   :  { %s5917_s0 = inlined_call_operand.hbm [shape: f32[2,18,24,128], index: 0, kind: input, shape index: {}]   ;;  %s5918_s1 = inlined_call_operand.hbm [shape: f32[2,18,24,128], index: 1, kind: input, shape index: {}]   ;;  %s5919_s2 = inlined_call_operand.hbm [shape: f32[2,18,24,128], index: 2, kind: input, shape index: {}]   ;;  %s5920_s3 = inlined_call_operand.hbm [shape: f32[9,128,128], index: 3, kind: input, shape index: {}]   ;;  %s5921_s4 = inlined_call_operand.vmem [shape: f32[1,128], index: 4, kind: input, shape index: {}]   ;;  %s5922_s5 = inlined_call_operand.vmem [shape: f32[1,128], index: 5, kind: input, shape index: {}]   ;;  %s5923_s6 = inlined_call_operand.hbm [shape: f32[2,16,16,128], index: 6, kind: output, shape index: {}]  }
   0x1   :  { %5947 = sst [smem:[#allocation31_spill]] %s5917_s0 }
   0x2   :  { %5948 = sst [smem:[#allocation32_spill]] %s5918_s1 }
   0x3   :  { %5949 = sst [smem:[#allocation33_spill]] %s5919_s2 }
   0x4   :  { %5950 = sst [smem:[#allocation34_spill]] %s5920_s3 }
   0x5   :  { %5951 = sst [smem:[#allocation35_spill]] %s5921_s4 }
   0x6   :  { %5952 = sst [smem:[#allocation36_spill]] %s5922_s5 }
   0x7   :  { %5953 = sst [smem:[#allocation37_spill]] %s5923_s6 }
   0x8   :  { %11 = vsyncpa [#allocation5], 0 }
   0x9   :  { %13 = vsyncpa [#allocation5 + $0x1], 0 }
   0xa   :  { %14 = vsyncpa [#allocation8], 0 }
   0xb   :  { %16 = vsyncpa [#allocation8 + $0x1], 0 }
   0xc   :  { %17 = vsyncpa [#allocation11], 0 }
   0xd   :  { %18 = vsyncpa [#allocation6], 0 }
   0xe   :  { %20 = vsyncpa [#allocation6 + $0x1], 0  ;;  %s5028_s21 = smov 0   ;;  %s5030_s22 = smov 0  }
   0xf   :  { %s5032_s23 = smov 0   ;;  %s5034_s24 = smov 0  }
  0x10   :  { %s5036_s25 = smov 0   ;;  %s5038_s26 = smov 0  }
  0x11   :  { %s5040_s27 = smov 0   ;;  %s5042_s28 = smov 0  }
  0x12   :  { %s5044_s29 = smov 0   ;;  %s5046_s30 = smov 0  }
  0x13   :  { %s5048_s7 = smov 0   ;;  %s5050_s8 = smov 0  }
  0x14   :  { %s5052_s9 = smov 0   ;;  %s5054_s10 = smov 0  }
  0x15 LB: > { %5954 = sst [smem:[#allocation18_spill]] %s4929_s22  ;;  %s5099_s11 = sadd.s32 4294967295, %s4977_s10   ;;  %s4977_s10 = sphi %s5054_s10, %s26_s10   ;;  %s4973_s9 = sphi %s5052_s9, %s6022_s9   ;;  %s4969_s8 = sphi %s5050_s8, %s6021_s8   ;;  %s4965_s7 = sphi %s5048_s7, %s6020_s7   ;;  %s4961_s30 = sphi %s5046_s30, %s6019_s30   ;;  %s4957_s29 = sphi %s5044_s29, %s6009_s29   ;;  %s4953_s28 = sphi %s5042_s28, %s6018_s28   ;;  %s4949_s27 = sphi %s5040_s27, %s6017_s27   ;;  %s4945_s26 = sphi %s5038_s26, %s6016_s26   ;;  %s4941_s25 = sphi %s5036_s25, %s6015_s25   ;;  %s4937_s24 = sphi %s5034_s24, %s6014_s24   ;;  %s4933_s23 = sphi %s5032_s23, %s6013_s23   ;;  %s4929_s22 = sphi %s5030_s22, %s6012_s22   ;;  %s4925_s21 = sphi %s5028_s21, %s6005_s21  }
  0x16   : > { %5955 = sst [smem:[#allocation19_spill]] %s4949_s27  ;;  %s35_s13 = sadd.s32 1, %s4969_s8 }
  0x17   : > { %5956 = sst [smem:[#allocation20_spill]] %s4957_s29  ;;  %s38_s14 = sadd.s32 1, %s4973_s9 }
  0x18   : > { %5957 = sst [smem:[#allocation21_spill]] %s4961_s30  ;;  %p36_p0 = scmp.ge.s32.totalorder %s35_s13, 2 }
  0x19   : > { %5958 = sst [smem:[#allocation22_spill]] %s4965_s7  ;;  %s47_s15 = sadd.s32 1, %s4957_s29 }
  0x1a   : > { %p54_p1 = scmp.ne.s32.totalorder %s4957_s29, %s4953_s28  ;;  %p55_p2 = scmp.eq.s32.totalorder %s4977_s10, 0 }
  0x1b   : > { %s6024_s13 = smov (%p36_p0, %s35_s13), 0  ;;  %s6026_s14 = smov (!%p36_p0, %s38_s14), %s4973_s9 }
  0x1c   : > { %5959 = sst [smem:[#allocation23_spill]] %s6024_s13  ;;  %s43_s16 = ssub.s32 %s4969_s8, %s6024_s13 }
  0x1d   : > { %p5118_p3 = por %p55_p2, %p54_p1  ;;  %p40_p4 = scmp.ge.s32.totalorder %s6026_s14, 2 }
  0x1e   : > { %p5929_p5 = scmp.ne.s32.totalorder %s4953_s28, %s4949_s27  ;;  %p5935_p6 = scmp.eq.s32.totalorder %s5099_s11, 0 }
  0x1f   : > { %s5960_s17 = scalar_select %p5118_p3, 1, 0 }
  0x20   : > { %s3054_s18 = sshll.u32 %s4969_s8, 3  ;;  %s6028_s14 = smov (%p40_p4, %s6026_s14), 0 }
  0x21   : > { %5961 = sst [smem:[#allocation24_spill]] %s6028_s14  ;;  %p5133_p7 = por %p5935_p6, %p5929_p5 }
  0x22   : > { %s71_s20 = sadd.s32 8, %s3054_s18  ;;  %s42_s12 = ssub.s32 %s4973_s9, %s6028_s14 }
  0x23   : > { %s5962_s19 = scalar_select %p5133_p7, 1, 0 }
  0x24   : > { %s3055_s6 = sshll.u32 %s6024_s13, 3  ;;  %s44_s7 = sor.u32 %s43_s16, %s42_s12 }
  0x25   : > { %s73_s30 = sadd.s32 8, %s3055_s6  ;;  %p45_p8 = scmp.eq.s32.totalorder %s44_s7, 0 }
  0x26   : > { %s75_s5 = ssub.s32 %s71_s20, %s73_s30  ;;  %s79_s2 = sadd.s32 1, %s4945_s26 }
  0x27   : > { %s76_s4 = sor.u32 %s75_s5, %s42_s12  ;;  %p86_p10 = scmp.ne.s32.totalorder %s4945_s26, %s4941_s25 }
  0x28   : > { %s5142_s1 = scalar_select %p45_p8, %s4957_s29, %s47_s15  }
  0x29   : > { %p77_p9 = scmp.eq.s32.totalorder %s76_s4, 0  ;;  %p92_p11 = scmp.ne.s32.totalorder %s4941_s25, %s4937_s24 }
  0x2a   : > { %5963 = sst [smem:[#allocation25_spill]] %s5142_s1  ;;  %s103_s16 = sadd.s32 9, %s3054_s18 }
  0x2b   : > { %s5149_s14 = scalar_select %p77_p9, %s4945_s26, %s79_s2  }
  0x2c   : > { %p5153_p12 = por %p86_p10, %p55_p2  ;;  %p5159_p13 = por %p92_p11, %p5935_p6 }
  0x2d   : > { %5964 = sst [smem:[#allocation26_spill]] %s5149_s14  ;;  %s105_s24 = sadd.s32 9, %s3055_s6 }
  0x2e   : > { %s5965_s5 = scalar_select %p5153_p12, 1, 0 }
  0x2f   : > { %s5966_s4 = scalar_select %p5159_p13, 1, 0 }
  0x30   : > { %s111_s30 = sadd.s32 1, %s4933_s23  ;;  %s107_s7 = ssub.s32 %s103_s16, %s105_s24 }
  0x31   : > { %p118_p0 = scmp.ne.s32.totalorder %s4933_s23, %s4929_s22  ;;  %s108_s2 = sor.u32 %s107_s7, %s42_s12 }
  0x32   : > { %p124_p4 = scmp.ne.s32.totalorder %s4929_s22, %s4925_s21  ;;  %p109_p8 = scmp.eq.s32.totalorder %s108_s2, 0 }
  0x33   : > { %p5170_p9 = por %p118_p0, %p55_p2  ;;  %p213_p11 = scmp.eq.s32.totalorder %s5099_s11, 3 }
  0x34   : > { %p5176_p10 = por %p124_p4, %p5935_p6  ;;  %s5973_s21 = sadd.s32 4294967294, %s4977_s10  }
  0x35   : > { %s5967_s15 = scalar_select %p5170_p9, 1, 0 }
  0x36   : > { %s5968_s18 = scalar_select %p5176_p10, 1, 0 }
  0x37   : > { %s5182_s20 = scalar_select %p109_p8, %s4933_s23, %s111_s30  }
  0x38   : > { %5969 = sst [smem:[#allocation27_spill]] %s5968_s18  ;;  %p5187_p5 = por %p213_p11, %p54_p1 }
  0x39   : > { %5970 = sst [smem:[#allocation28_spill]] %s5182_s20  ;;  %p219_p13 = scmp.eq.s32.totalorder %s5973_s21, 3 }
  0x3a   : > { %s5971_s6 = scalar_select %p5187_p5, 1, 0 }
  0x3b   : > { %p3058_p7 = scmp.ge.s32.totalorder %s4977_s10, 1  ;;  %p226_p2 = scmp.lt.s32.totalorder %s4977_s10, 5 }
  0x3c   : > { %5972 = sst [smem:[#allocation29_spill]] %s5971_s6  ;;  %p5974_p0 = scmp.ne.s32.totalorder %s4953_s28, %s4949_s27 }
  0x3d   : > { %p5202_p4 = pnand %p3058_p7, %p226_p2  ;;  %s4979_s24 = smov [#allocation10]  }
  0x3e   : > { %p5198_p12 = por %p219_p13, %p5974_p0  ;;  %s238_s30 = sshll.u32 %s4979_s24, 4  ;;  %s239_s30 = int_to_ptr.vmem [resolvable:$true] %s238_s30 }
  0x3f   : > { %s5977_s16 = scalar_select %p5202_p4, 1, 0 }
  0x40   : > { %s5975_s12 = scalar_select %p5198_p12, 1, 0 }
  0x41   : > { %p4563_p1 = pneg %p5202_p4  ;;  %s5979_s3 = sld [smem:[#allocation34_spill]] }
  0x42   : > { %5976 = sst [smem:[#allocation30_spill]] %s5975_s12 }
  0x43   : > { %p5210_p8 = pnand %p4563_p1, %p5935_p6 }
  0x45   : > { %p4705_p13 = pneg %p5210_p8 }
  0x47   : > { %s4703_s13 = scalar_lea.hbm %s5979_s3, 18432 }
  0x48   : > { %p4704_p7 = scmp.ne.s32.totalorder %s5979_s3, %s4703_s13  ;;  %p4710_p0 = scmp.lt.u32.totalorder %s4703_s13, %s5979_s3 }
  0x4a   : > { %p4706_p11 = pnand %p4705_p13, %p4704_p7 }
  0x4c   : > { %p4707_p2 = pneg %p4706_p11 }
  0x4e   : > { %p4712_p1 = pnand %p4710_p0, %p4707_p2 }
  0x50   : > { %4715 = shalt.err (!%p4712_p1)
}
  0x51   : > { %s4716_s12 = scalar_lea.vmem %s239_s30, 18432  ;;  %p4724_p10 = scmp.lt.s32.totalorder %s239_s30, %s239_s30 }
  0x52   : > { %p4717_p6 = scmp.ne.s32.totalorder %s239_s30, %s4716_s12  ;;  %p4725_p4 = scmp.lt.s32.totalorder %s4716_s12, %s4716_s12 }
  0x54   : > { %p4719_p12 = pnand %p4717_p6, %p4705_p13  ;;  %p4726_p9 = por %p4725_p4, %p4724_p10 }
  0x56   : > { %p4720_p5 = pneg %p4719_p12 }
  0x58   : > { %p4727_p3 = pnand %p4726_p9, %p4720_p5 }
  0x5a   : > { %4730 = shalt.err (!%p4727_p3)
}
  0x5b   : > { %s4980_s1 = smov 128   ;;  %s4981_s14 = smov 8  }
  0x5c   : > { %4566 = dma.hbm_to_vmem [thread:$0]  (!%p5210_p8), %s5979_s3, 18432, %s239_s30, [#allocation11], %s4980_s1, %s4980_s1, %s4981_s14  }
  0x5d   : > { %p3060_p7 = scmp.ge.s32.totalorder %s4977_s10, 4 }
  0x5e   : > { %p5980_p11 = scmp.ne.s32.totalorder (!%p3060_p7), %s5960_s17, 0 }
  0x5f   : > { %254 = sbr.rel (%p3060_p7) target bundleno = 189 (0xbd), region = 28 }
  0x66   : > { %257 = sbr.rel (!%p5980_p11) target bundleno = 133 (0x85), region = 32  ;;  %s258_s13 = sand.u32 (%p5980_p11), 1, %s4957_s29  }
  0x67   : > { %s4544_s20 = smul.u32 (%p5980_p11), 192, %s258_s13  ;;  %s5234_s12 = scalar_lea.sflag (%p5980_p11), [#allocation5], %s258_s13 }
  0x68   : > { %s4545_s27 = smul.u32 (%p5980_p11), 24, %s4969_s8  ;;  %s5981_s0 = sld [smem:[#allocation31_spill]] (%p5980_p11) }
  0x69   : > { %s262_s24 = scalar_lea.vmem (%p5980_p11), [#allocation4], %s4544_s20  ;;  %s4546_s7 = smul.u32 (%p5980_p11), 54, %s4973_s9 }
  0x6a   : > { %s280_s6 = sshll.u32 (%p5980_p11), %s262_s24, 4  ;;  %s5238_s6 = int_to_ptr.vmem [resolvable:$true] %s280_s6 }
  0x6b   : > { %s275_s30 = sadd.s32 (%p5980_p11), %s4546_s7, %s4545_s27 }
  0x6c   : > { %s3066_s1 = sshll.u32 (%p5980_p11), %s275_s30, 7 }
  0x6e   : > { %s277_s17 = scalar_lea.hbm %s5981_s0, %s3066_s1  ;;  %s4735_s29 = scalar_lea.hbm %s5981_s0, 13824 }
  0x6f   : > { %s4731_s21 = scalar_lea.hbm %s277_s17, 3072  ;;  %p4736_p5 = scmp.lt.u32.totalorder %s277_s17, %s5981_s0 }
  0x70   : > { %p4732_p3 = scmp.ne.s32.totalorder %s277_s17, %s4731_s21  ;;  %p4737_p6 = scmp.lt.u32.totalorder %s4735_s29, %s4731_s21 }
  0x71   : > { %p4739_p9 = scmp.lt.u32.totalorder %s4731_s21, %s277_s17 }
  0x72   : > { %p4738_p12 = por %p4737_p6, %p4736_p5 }
  0x74   : > { %p4740_p10 = por %p4739_p9, %p4738_p12 }
  0x76   : > { %p4741_p4 = pnand %p4740_p10, %p4732_p3 }
  0x78   : > { %4744 = shalt.err (!%p4741_p4)
}
  0x79   : > { %s4745_s27 = scalar_lea.vmem %s5238_s6, 3072  ;;  %s4982_s20 = smov [#allocation4]  }
  0x7a   : > { %p4746_p8 = scmp.ne.s32.totalorder %s5238_s6, %s4745_s27  ;;  %s4749_s24 = sshll.u32 %s4982_s20, 4  ;;  %s4750_s24 = int_to_ptr.vmem [resolvable:$false] %s4749_s24 }
  0x7b   : > { %s4751_s3 = scalar_lea.vmem %s4750_s24, 6144  ;;  %p4752_p13 = scmp.lt.s32.totalorder %s5238_s6, %s4750_s24 }
  0x7c   : > { %p4753_p2 = scmp.lt.s32.totalorder %s4751_s3, %s4745_s27 }
  0x7e   : > { %p4754_p0 = por %p4753_p2, %p4752_p13 }
  0x80   : > { %p4755_p1 = pnand %p4754_p0, %p4746_p8 }
  0x82   : > { %4758 = shalt.err (!%p4755_p1)
}
  0x83   : > { %s4983_s22 = smov 128   ;;  %s4984_s29 = smov 8  }
  0x84   : > { %286 = dma.hbm_to_vmem [thread:$0]  %s277_s17, 3072, %s5238_s6, %s5234_s12, %s4983_s22, %s4983_s22, %s4984_s29  }
  0x85 PF: > { %s290_s18 = sand.u32 1, %s4977_s10   ;;  %s292_s7 = sand.u32 1, %s4945_s26  }
  0x86   : > { %s4547_s30 = smul.u32 24, %s292_s7  ;;  %s5982_s12 = sld [smem:[#allocation32_spill]] }
  0x87   : > { %s3070_s1 = smul.u32 24, %s4969_s8  ;;  %s317_s24 = sand.u32 1, %s4933_s23  }
  0x88   : > { %s2943_s14 = smul.u32 54, %s4973_s9  ;;  %s294_s2 = scalar_lea.vmem [#allocation7], %s4547_s30 }
  0x89   : > { %s305_s21 = sshll.u32 %s294_s2, 4  ;;  %s5983_s0 = sld [smem:[#allocation33_spill]]  ;;  %s5258_s21 = int_to_ptr.vmem [resolvable:$true] %s305_s21 }
  0x8a   : > { %s2944_s13 = sadd.s32 %s3070_s1, %s2943_s14  ;;  %s5271_s30 = scalar_lea.sflag [#allocation8], %s290_s18 }
  0x8b   : > { %s3071_s27 = sshll.u32 %s2944_s13, 7  ;;  %p5984_p11 = scmp.ne.s32.totalorder %s5965_s5, 0 }
  0x8c   : > { %s2946_s17 = scalar_lea.hbm %s5982_s12, %s3071_s27  ;;  %s4763_s13 = scalar_lea.hbm %s5982_s12, 13824 }
  0x8d   : > { %s5264_s3 = scalar_lea.hbm %s2946_s17, 3072  ;;  %s4787_s1 = scalar_lea.hbm %s2946_s17, 3456 }
  0x8e   : > { %p4760_p7 = scmp.ne.s32.totalorder %s5264_s3, %s4787_s1  ;;  %p4764_p6 = scmp.lt.u32.totalorder %s5264_s3, %s5982_s12 }
  0x8f   : > { %s5269_s7 = scalar_lea.hbm %s5983_s0, %s3071_s27  ;;  %p4765_p12 = scmp.lt.u32.totalorder %s4763_s13, %s4787_s1 }
  0x90   : > { %p4761_p3 = pnand %p4760_p7, %p5984_p11  ;;  %p4767_p10 = scmp.lt.u32.totalorder %s4787_s1, %s5264_s3 }
  0x91   : > { %p4766_p9 = por %p4765_p12, %p4764_p6 }
  0x92   : > { %p4762_p5 = pneg %p4761_p3 }
  0x93   : > { %p4768_p4 = por %p4767_p10, %p4766_p9 }
  0x95   : > { %p4769_p8 = pnand %p4768_p4, %p4762_p5 }
  0x97   : > { %4772 = shalt.err (!%p4769_p8)
}
  0x98   : > { %s4773_s18 = scalar_lea.vmem %s5258_s21, 384  ;;  %s4985_s27 = smov [#allocation7]  }
  0x99   : > { %p4774_p13 = scmp.ne.s32.totalorder %s5258_s21, %s4773_s18  ;;  %s4777_s17 = sshll.u32 %s4985_s27, 4  ;;  %s4778_s17 = int_to_ptr.vmem [resolvable:$false] %s4777_s17 }
  0x9a   : > { %s4779_s22 = scalar_lea.vmem %s4778_s17, 768  ;;  %p4780_p1 = scmp.lt.s32.totalorder %s5258_s21, %s4778_s17 }
  0x9b   : > { %p4775_p2 = pnand %p4774_p13, %p5984_p11  ;;  %p4781_p7 = scmp.lt.s32.totalorder %s4779_s22, %s4773_s18 }
  0x9d   : > { %p4776_p0 = pneg %p4775_p2  ;;  %p4782_p3 = por %p4781_p7, %p4780_p1 }
  0x9f   : > { %p4783_p6 = pnand %p4782_p3, %p4776_p0 }
  0xa1   : > { %4786 = shalt.err (!%p4783_p6)
}
  0xa2   : > { %s4986_s29 = smov 128   ;;  %s4987_s1 = smov 8  }
  0xa3   : > { %4554 = dma.hbm_to_vmem [thread:$0]  (%p5984_p11), %s5264_s3, 384, %s5258_s21, %s5271_s30, %s4986_s29, %s4986_s29, %s4987_s1  }
  0xa4   : > { %s4548_s14 = smul.u32 24, %s317_s24  ;;  %s5300_s2 = scalar_lea.hbm %s5269_s7, 3456 }
  0xa5   : > { %s4816_s6 = scalar_lea.hbm %s5269_s7, 3840  ;;  %p5985_p12 = scmp.ne.s32.totalorder %s5967_s15, 0 }
  0xa6   : > { %s319_s13 = scalar_lea.vmem [#allocation9], %s4548_s14  ;;  %p4789_p5 = scmp.ne.s32.totalorder %s5300_s2, %s4816_s6 }
  0xa7   : > { %s330_s20 = sshll.u32 %s319_s13, 4  ;;  %s4792_s21 = scalar_lea.hbm %s5983_s0, 13824  ;;  %s5302_s20 = int_to_ptr.vmem [resolvable:$true] %s330_s20 }
  0xa8   : > { %p4790_p9 = pnand %p4789_p5, %p5985_p12  ;;  %p4793_p11 = scmp.lt.u32.totalorder %s5300_s2, %s5983_s0 }
  0xa9   : > { %p4794_p4 = scmp.lt.u32.totalorder %s4792_s21, %s4816_s6  ;;  %p4796_p13 = scmp.lt.u32.totalorder %s4816_s6, %s5300_s2 }
  0xaa   : > { %p4791_p10 = pneg %p4790_p9 }
  0xab   : > { %p4795_p8 = por %p4794_p4, %p4793_p11 }
  0xad   : > { %p4797_p2 = por %p4796_p13, %p4795_p8 }
  0xaf   : > { %p4798_p0 = pnand %p4797_p2, %p4791_p10 }
  0xb1   : > { %4801 = shalt.err (!%p4798_p0)
}
  0xb2   : > { %s4802_s7 = scalar_lea.vmem %s5302_s20, 384  ;;  %s4988_s27 = smov [#allocation9]  }
  0xb3   : > { %p4803_p1 = scmp.ne.s32.totalorder %s5302_s20, %s4802_s7  ;;  %s4806_s17 = sshll.u32 %s4988_s27, 4  ;;  %s4807_s17 = int_to_ptr.vmem [resolvable:$false] %s4806_s17 }
  0xb4   : > { %s4808_s22 = scalar_lea.vmem %s4807_s17, 768  ;;  %p4809_p6 = scmp.lt.s32.totalorder %s5302_s20, %s4807_s17 }
  0xb5   : > { %p4804_p7 = pnand %p4803_p1, %p5985_p12  ;;  %p4810_p5 = scmp.lt.s32.totalorder %s4808_s22, %s4802_s7 }
  0xb7   : > { %p4805_p3 = pneg %p4804_p7  ;;  %p4811_p9 = por %p4810_p5, %p4809_p6 }
  0xb9   : > { %p4812_p11 = pnand %p4811_p9, %p4805_p3 }
  0xbb   : > { %4815 = shalt.err (!%p4812_p11)
}
  0xbc   : > { %4555 = dma.hbm_to_vmem [thread:$0]  (%p5985_p12), %s5300_s2, 384, %s5302_s20, %s5271_s30, %s4986_s29, %s4986_s29, %s4987_s1  }
  0xbd PF: > { %p5986_p10 = scmp.ne.s32.totalorder %s5977_s16, 0 }
  0xbe   : > { %s5332_s14 = sand.u32 (!%p5986_p10), 1, %s4953_s28   ;;  %p5987_p4 = scmp.ne.s32.totalorder (!%p5986_p10), %s5962_s19, 0 }
  0xbf   : > { %342 = sbr.rel (%p5986_p10) target bundleno = 704 (0x2c0), region = 44  ;;  %s345_s6 = scalar_lea.sflag (!%p5986_p10), [#allocation5], %s5332_s14 }
  0xc0   : > { %s4549_s13 = smul.u32 (!%p5986_p10), 192, %s5332_s14 }
  0xc2   : > { %s5336_s15 = scalar_lea.vmem (!%p5986_p10), [#allocation4], %s4549_s13 }
  0xc6   : > { %4902 = dma.done.wait (%p5987_p4), %s345_s6, 3072  }
  0xc7   : > { %4904 = vsyncadd (%p5987_p4), %s345_s6, 4294964224  ;;  %s353_s16 = sand.u32 1, %s5099_s11   ;;  %s355_s30 = sand.u32 1, %s4941_s25  }
  0xc8   : > { %s4550_s29 = smul.u32 24, %s355_s30  ;;  %s354_s1 = scalar_lea.sflag [#allocation8], %s353_s16 }
  0xc9   : > { %p5988_p12 = scmp.ne.s32.totalorder %s5966_s4, 0 }
  0xca   : > { %s5344_s2 = scalar_lea.vmem [#allocation7], %s4550_s29 }
  0xcb   : > { %4906 = dma.done.wait (%p5988_p12), %s354_s1, 384  }
  0xcc   : > { %4908 = vsyncadd (%p5988_p12), %s354_s1, 4294966912  ;;  %s5989_s20 = sld [smem:[#allocation18_spill]]  ;;  %s5990_s5 = sld [smem:[#allocation27_spill]] }
  0xd2   : > { %s364_s18 = sand.u32 1, %s5989_s20   ;;  %p5991_p8 = scmp.ne.s32.totalorder %s5990_s5, 0 }
  0xd3   : > { %s4551_s21 = smul.u32 24, %s364_s18 }
  0xd5   : > { %s5351_s19 = scalar_lea.vmem [#allocation9], %s4551_s21 }
  0xd6   : > { %4910 = dma.done.wait (%p5991_p8), %s354_s1, 384  }
  0xd7   : > { %4912 = vsyncadd (%p5991_p8), %s354_s1, 4294966912  ;;  %p5992_p13 = scmp.eq.s32.totalorder %s5099_s11, 0 }
  0xd9   : > { %4914 = dma.done.wait (%p5992_p13), [#allocation11], 18432   ;;  %p5993_p2 = pmov %p5992_p13 }
  0xda   : > { %v548_v0 = vld [vmem:[#allocation10 + $0x80] sm:$0xff]  ;;  %v549_v1 = vld [vmem:[#allocation10 + $0x88] sm:$0xff]  ;;  %v550_v5 = vld [vmem:[#allocation10 + $0x90] sm:$0xff]  ;;  %s5994_s3 = sld [smem:[#allocation35_spill]]  ;;  %s5995_s27 = sld [smem:[#allocation36_spill]] }
  0xdb   : > { %4916 = vsyncadd (%p5993_p2), [#allocation11], 4294948864  ;;  %v1233_v2 = vld [vmem:[#allocation10 + $0x180] sm:$0xff]  ;;  %v4060_v3 = vpack.c.bf16 %v549_v1, %v548_v0  ;;  %v1234_v4 = vld [vmem:[#allocation10 + $0x188] sm:$0xff]  ;;  %s3077_s17 = sshll.u32 %s5332_s14, 7  ;;  %s5996_s13 = sld [smem:[#allocation21_spill]] }
  0xdc   : > { %v551_v6 = vld [vmem:[#allocation10 + $0x98] sm:$0xff]  ;;  %v4188_v7 = vpack.c.bf16 %v1234_v4, %v1233_v2  ;;  %v1235_v9 = vld [vmem:[#allocation10 + $0x190] sm:$0xff]  ;;  %v552_v11 = vld [vmem:[#allocation10 + $0xa0] sm:$0xff]  ;;  %s5779_s22 = scalar_lea.vmem [#allocation12], %s3077_s17  ;;  %s5997_s6 = sld [smem:[#allocation22_spill]] }
  0xdd   : > { %v4064_v8 = vpack.c.bf16 %v551_v6, %v550_v5  ;;  %v1236_v10 = vld [vmem:[#allocation10 + $0x198] sm:$0xff]  ;;  %4061 = vmatprep.subr.bf16.mxu1 %v4060_v3  ;;  %v553_v13 = vld [vmem:[#allocation10 + $0xa8] sm:$0xff]  ;;  %v1237_v14 = vld [vmem:[#allocation10 + $0x1a0] sm:$0xff]  ;;  %s2899_s1 = sshll.u32 %s5779_s22, 4  ;;  %s5999_s18 = sld [smem:[#allocation37_spill]]  ;;  %s5837_s1 = int_to_ptr.vmem [resolvable:$true] %s2899_s1 }
  0xde   : > { %v4192_v12 = vpack.c.bf16 %v1236_v10, %v1235_v9  ;;  %v1238_v15 = vld [vmem:[#allocation10 + $0x1a8] sm:$0xff]  ;;  %4189 = vmatprep.subr.bf16.mxu0 %v4188_v7  ;;  %4063 = vmatpush3.bf16.msra.mxu1 %v4060_v3  ;;  %v4068_v16 = vpack.c.bf16 %v553_v13, %v552_v11  ;;  %v554_v18 = vld [vmem:[#allocation10 + $0xb0] sm:$0xff]  ;;  %v555_v19 = vld [vmem:[#allocation10 + $0xb8] sm:$0xff]  ;;  %s4817_s11 = scalar_lea.vmem %s5837_s1, 2048  ;;  %s4990_s4 = smov [#allocation12]  }
  0xdf   : > { %4191 = vmatpush3.bf16.msra.mxu0 %v4188_v7  ;;  %4065 = vmatprep.subr.bf16.mxu1 %v4064_v8  ;;  %v4196_v17 = vpack.c.bf16 %v1238_v15, %v1237_v14  ;;  %v1239_v20 = vld [vmem:[#allocation10 + $0x1b0] sm:$0xff]  ;;  %v1240_v21 = vld [vmem:[#allocation10 + $0x1b8] sm:$0xff]  ;;  %v4072_v22 = vpack.c.bf16 %v555_v19, %v554_v18  ;;  %v556_v23 = vld [vmem:[#allocation10 + $0xc0] sm:$0xff]  ;;  %p4818_p0 = scmp.ne.s32.totalorder %s5837_s1, %s4817_s11 }
  0xe0   : > { %4193 = vmatprep.subr.bf16.mxu0 %v4192_v12  ;;  %v557_v24 = vld [vmem:[#allocation10 + $0xc8] sm:$0xff]  ;;  %v4200_v25 = vpack.c.bf16 %v1240_v21, %v1239_v20  ;;  %v1241_v26 = vld [vmem:[#allocation10 + $0x1c0] sm:$0xff]  ;;  %v5369_v30 = vld [vmem:[%s5336_s15 + $0x18] sm:$0xff] }
  0xe1   : > { %v1242_v27 = vld [vmem:[#allocation10 + $0x1c8] sm:$0xff]  ;;  %v5362_v28 = vld [vmem:[%s5336_s15] sm:$0xff]  ;;  %v5372_v31 = vld [vmem:[%s5336_s15 + $0x10] sm:$0xff]  ;;  %447 = vst [vmem:[#allocation2 + $0x18] sm:$0xff] %v5369_v30  ;;  %3752 = vmatprep.mubr.f32.mxu0 %v5369_v30  ;;  %v4076_v33 = vpack.c.bf16 %v557_v24, %v556_v23 }
  0xe2   : > { %4067 = vmatpush3.bf16.msra.mxu1 %v4064_v8  ;;  %v5365_v29 = vld [vmem:[%s5336_s15 + $0x8] sm:$0xff]  ;;  %444 = vst [vmem:[#allocation2] sm:$0xff] %v5362_v28  ;;  %446 = vst [vmem:[#allocation2 + $0x10] sm:$0xff] %v5372_v31  ;;  %v5379_v32 = vld [vmem:[%s5336_s15 + $0x20] sm:$0xff]  ;;  %v4204_v35 = vpack.c.bf16 %v1242_v27, %v1241_v26  ;;  %s3083_s16 = sshll.u32 %s5997_s6, 5 }
  0xe3   : > { %4195 = vmatpush3.bf16.msra.mxu0 %v4192_v12  ;;  %4069 = vmatprep.subr.bf16.mxu1 %v4068_v16  ;;  %445 = vst [vmem:[#allocation2 + $0x8] sm:$0xff] %v5365_v29  ;;  %448 = vst [vmem:[#allocation2 + $0x20] sm:$0xff] %v5379_v32  ;;  %v5383_v34 = vld [vmem:[%s5336_s15 + $0x28] sm:$0xff]  ;;  %v558_v36 = vld [vmem:[#allocation10 + $0xd0] sm:$0xff] }
  0xe4   : > { %4197 = vmatprep.subr.bf16.mxu0 %v4196_v17  ;;  %v559_v37 = vld [vmem:[#allocation10 + $0xd8] sm:$0xff]  ;;  %449 = vst [vmem:[#allocation2 + $0x28] sm:$0xff] %v5383_v34  ;;  %v5387_v38 = vld [vmem:[%s5336_s15 + $0x30] sm:$0xff]  ;;  %v5395_v42 = vld [vmem:[%s5336_s15 + $0x40] sm:$0xff] }
  0xe5   : > { %v1243_v39 = vld [vmem:[#allocation10 + $0x1d0] sm:$0xff]  ;;  %v1244_v40 = vld [vmem:[#allocation10 + $0x1d8] sm:$0xff]  ;;  %450 = vst [vmem:[#allocation2 + $0x30] sm:$0xff] %v5387_v38  ;;  %v5398_v43 = vld [vmem:[%s5336_s15 + $0x48] sm:$0xff]  ;;  %v4080_v44 = vpack.c.bf16 %v559_v37, %v558_v36 }
  0xe6   : > { %4071 = vmatpush3.bf16.msra.mxu1 %v4068_v16  ;;  %v5391_v41 = vld [vmem:[%s5336_s15 + $0x38] sm:$0xff]  ;;  %v560_v45 = vld [vmem:[#allocation10 + $0xe0] sm:$0xff]  ;;  %452 = vst [vmem:[#allocation2 + $0x40] sm:$0xff] %v5395_v42  ;;  %453 = vst [vmem:[#allocation2 + $0x48] sm:$0xff] %v5398_v43  ;;  %v4208_v47 = vpack.c.bf16 %v1244_v40, %v1243_v39 }
  0xe7   : > { %4199 = vmatpush3.bf16.msra.mxu0 %v4196_v17  ;;  %4073 = vmatprep.subr.bf16.mxu1 %v4072_v22  ;;  %451 = vst [vmem:[#allocation2 + $0x38] sm:$0xff] %v5391_v41  ;;  %v5403_v46 = vld [vmem:[%s5336_s15 + $0x50] sm:$0xff]  ;;  %v561_v48 = vld [vmem:[#allocation10 + $0xe8] sm:$0xff]  ;;  %v5407_v49 = vld [vmem:[%s5336_s15 + $0x58] sm:$0xff] }
  0xe8   : > { %4201 = vmatprep.subr.bf16.mxu0 %v4200_v25  ;;  %454 = vst [vmem:[#allocation2 + $0x50] sm:$0xff] %v5403_v46  ;;  %v5410_v50 = vld [vmem:[%s5336_s15 + $0x60] sm:$0xff]  ;;  %v1246_v52 = vld [vmem:[#allocation10 + $0x1e8] sm:$0xff]  ;;  %455 = vst [vmem:[#allocation2 + $0x58] sm:$0xff] %v5407_v49  ;;  %v4084_v54 = vpack.c.bf16 %v561_v48, %v560_v45 }
  0xe9   : > { %v1245_v51 = vld [vmem:[#allocation10 + $0x1e0] sm:$0xff]  ;;  %456 = vst [vmem:[#allocation2 + $0x60] sm:$0xff] %v5410_v50  ;;  %v562_v55 = vld [vmem:[#allocation10 + $0xf0] sm:$0xff]  ;;  %v563_v57 = vld [vmem:[#allocation10 + $0xf8] sm:$0xff] }
  0xea   : > { %4075 = vmatpush3.bf16.msra.mxu1 %v4072_v22  ;;  %v523_v53 = vld [vmem:[#allocation2 + $0x1] sm:$0xff]  ;;  %v4212_v56 = vpack.c.bf16 %v1246_v52, %v1245_v51  ;;  %v5415_v58 = vld [vmem:[%s5336_s15 + $0x68] sm:$0xff]  ;;  %v5418_v59 = vld [vmem:[%s5336_s15 + $0x70] sm:$0xff]  ;;  %v4088_v63 = vpack.c.bf16 %v563_v57, %v562_v55  ;;  %v4989_v52 = vmov 0.0  }
  0xeb   : > { %4203 = vmatpush3.bf16.msra.mxu0 %v4200_v25  ;;  %4077 = vmatprep.subr.bf16.mxu1 %v4076_v33  ;;  %v1247_v60 = vld [vmem:[#allocation10 + $0x1f0] sm:$0xff]  ;;  %v1248_v61 = vld [vmem:[#allocation10 + $0x1f8] sm:$0xff]  ;;  %457 = vst [vmem:[#allocation2 + $0x68] sm:$0xff] %v5415_v58  ;;  %458 = vst [vmem:[#allocation2 + $0x70] sm:$0xff] %v5418_v59 }
  0xec   : > { %4205 = vmatprep.subr.bf16.mxu0 %v4204_v35  ;;  %3480 = vmatprep.mubr.f32.mxu1 %v523_v53  ;;  %v5423_v62 = vld [vmem:[%s5336_s15 + $0x78] sm:$0xff]  ;;  %v5427_v0 = vld [vmem:[%s5336_s15 + $0x80] sm:$0xff]  ;;  %v4216_v1 = vpack.c.bf16 %v1248_v61, %v1247_v60  ;;  %v508_v3 = vld [vmem:[#allocation10 + $0x8] sm:$0xff]  ;;  %480 = vst [vmem:[#allocation2 + $0xf0] sm:$0xff] %v4989_v52 }
  0xed   : > { %459 = vst [vmem:[#allocation2 + $0x78] sm:$0xff] %v5423_v62  ;;  %v507_v2 = vld [vmem:[#allocation10] sm:$0xff]  ;;  %460 = vst [vmem:[#allocation2 + $0x80] sm:$0xff] %v5427_v0  ;;  %v1686_v5 = vld [vmem:[#allocation10 + $0x288] sm:$0xff] }
  0xee   : > { %4079 = vmatpush3.bf16.msra.mxu1 %v4076_v33  ;;  %v1685_v4 = vld [vmem:[#allocation10 + $0x280] sm:$0xff]  ;;  %v5431_v6 = vld [vmem:[%s5336_s15 + $0x88] sm:$0xff]  ;;  %v5434_v7 = vld [vmem:[%s5336_s15 + $0x90] sm:$0xff]  ;;  %v4092_v8 = vpack.c.bf16 %v508_v3, %v507_v2 }
  0xef   : > { %4207 = vmatpush3.bf16.msra.mxu0 %v4204_v35  ;;  %4081 = vmatprep.subr.bf16.mxu1 %v4080_v44  ;;  %461 = vst [vmem:[#allocation2 + $0x88] sm:$0xff] %v5431_v6  ;;  %462 = vst [vmem:[#allocation2 + $0x90] sm:$0xff] %v5434_v7  ;;  %v5439_v9 = vld [vmem:[%s5336_s15 + $0x98] sm:$0xff]  ;;  %v5442_v10 = vld [vmem:[%s5336_s15 + $0xa0] sm:$0xff]  ;;  %v4220_v12 = vpack.c.bf16 %v1686_v5, %v1685_v4 }
  0xf0   : > { %4209 = vmatprep.subr.bf16.mxu0 %v4208_v47  ;;  %v5445_v11 = vld [vmem:[%s5336_s15 + $0xa8] sm:$0xff]  ;;  %v509_v13 = vld [vmem:[#allocation10 + $0x10] sm:$0xff]  ;;  %463 = vst [vmem:[#allocation2 + $0x98] sm:$0xff] %v5439_v9  ;;  %464 = vst [vmem:[#allocation2 + $0xa0] sm:$0xff] %v5442_v10 }
  0xf1   : > { %465 = vst [vmem:[#allocation2 + $0xa8] sm:$0xff] %v5445_v11  ;;  %v510_v14 = vld [vmem:[#allocation10 + $0x18] sm:$0xff]  ;;  %v1687_v15 = vld [vmem:[#allocation10 + $0x290] sm:$0xff]  ;;  %v524_v17 = vld [vmem:[#allocation2 + $0x9] sm:$0xff] }
  0xf2   : > { %4083 = vmatpush3.bf16.msra.mxu1 %v4080_v44  ;;  %v5451_v16 = vld [vmem:[%s5336_s15 + $0xb0] sm:$0xff]  ;;  %v1688_v18 = vld [vmem:[#allocation10 + $0x298] sm:$0xff]  ;;  %v4096_v22 = vpack.c.bf16 %v510_v14, %v509_v13  ;;  %v511_v23 = vld [vmem:[#allocation10 + $0x20] sm:$0xff] }
  0xf3   : > { %4211 = vmatpush3.bf16.msra.mxu0 %v4208_v47  ;;  %4085 = vmatprep.subr.bf16.mxu1 %v4084_v54  ;;  %466 = vst [vmem:[#allocation2 + $0xb0] sm:$0xff] %v5451_v16  ;;  %v5455_v19 = vld [vmem:[%s5336_s15 + $0xb8] sm:$0xff]  ;;  %v525_v21 = vld [vmem:[#allocation2 + $0x11] sm:$0xff]  ;;  %v4224_v24 = vpack.c.bf16 %v1688_v18, %v1687_v15  ;;  %v1689_v26 = vld [vmem:[#allocation10 + $0x2a0] sm:$0xff]  ;;  %s3087_s15 = sshll.u32 %s5996_s13, 4 }
  0xf4   : > { %4213 = vmatprep.subr.bf16.mxu0 %v4212_v56  ;;  %467 = vst [vmem:[#allocation2 + $0xb8] sm:$0xff] %v5455_v19  ;;  %v5459_v20 = vld [vmem:[%s5344_s2] sm:$0xff]  ;;  %v512_v25 = vld [vmem:[#allocation10 + $0x28] sm:$0xff]  ;;  %v513_v44 = vld [vmem:[#allocation10 + $0x30] sm:$0xff]  ;;  %s2896_s30 = sadd.s32 %s3087_s15, %s3083_s16 }
  0xf5   : > { %471 = vst [vmem:[#allocation2 + $0xc0] sm:$0xff] %v5459_v20  ;;  %v5463_v27 = vld [vmem:[%s5344_s2 + $0x8] sm:$0xff]  ;;  %v526_v33 = vld [vmem:[#allocation2 + $0x19] sm:$0xff]  ;;  %v4100_v39 = vpack.c.bf16 %v512_v25, %v511_v23  ;;  %s3084_s29 = sshll.u32 %s2896_s30, 7 }
  0xf6   : > { %4087 = vmatpush3.bf16.msra.mxu1 %v4084_v54  ;;  %v1690_v35 = vld [vmem:[#allocation10 + $0x2a8] sm:$0xff]  ;;  %472 = vst [vmem:[#allocation2 + $0xc8] sm:$0xff] %v5463_v27  ;;  %v527_v37 = vld [vmem:[#allocation2 + $0x21] sm:$0xff]  ;;  %v1691_v48 = vld [vmem:[#allocation10 + $0x2b0] sm:$0xff]  ;;  %s5835_s21 = scalar_lea.hbm %s5999_s18, %s3084_s29 }
  0xf7   : > { %4215 = vmatpush3.bf16.msra.mxu0 %v4212_v56  ;;  %4089 = vmatprep.subr.bf16.mxu1 %v4088_v63  ;;  %v5468_v36 = vld [vmem:[%s5344_s2 + $0x10] sm:$0xff]  ;;  %v4228_v40 = vpack.c.bf16 %v1690_v35, %v1689_v26  ;;  %v514_v45 = vld [vmem:[#allocation10 + $0x38] sm:$0xff]  ;;  %v515_v56 = vld [vmem:[#allocation10 + $0x40] sm:$0xff]  ;;  %s5998_s2 = sld [smem:[#allocation29_spill]] }
  0xf8   : > { %4217 = vmatprep.subr.bf16.mxu0 %v4216_v1  ;;  %473 = vst [vmem:[#allocation2 + $0xd0] sm:$0xff] %v5468_v36  ;;  %v528_v47 = vld [vmem:[#allocation2 + $0x29] sm:$0xff]  ;;  %v1692_v51 = vld [vmem:[#allocation10 + $0x2b8] sm:$0xff]  ;;  %v5474_v53 = vld [vmem:[#allocation2 + $0x31] sm:$0xff]  ;;  %v4104_v54 = vpack.c.bf16 %v514_v45, %v513_v44 }
  0xf9   : > { %v4232_v55 = vpack.c.bf16 %v1692_v51, %v1691_v48  ;;  %v516_v57 = vld [vmem:[#allocation10 + $0x48] sm:$0xff]  ;;  %v5478_v60 = vld [vmem:[#allocation2 + $0x39] sm:$0xff]  ;;  %v1693_v61 = vld [vmem:[#allocation10 + $0x2c0] sm:$0xff] }
  0xfa   : > { %4091 = vmatpush3.bf16.msra.mxu1 %v4088_v63  ;;  %v1694_v63 = vld [vmem:[#allocation10 + $0x2c8] sm:$0xff]  ;;  %v4108_v2 = vpack.c.bf16 %v516_v57, %v515_v56  ;;  %v517_v4 = vld [vmem:[#allocation10 + $0x50] sm:$0xff]  ;;  %v518_v5 = vld [vmem:[#allocation10 + $0x58] sm:$0xff] }
  0xfb   : > { %4219 = vmatpush3.bf16.msra.mxu0 %v4216_v1  ;;  %4093 = vmatprep.subr.bf16.mxu1 %v4092_v8  ;;  %v5481_v1 = vld [vmem:[#allocation2 + $0x41] sm:$0xff]  ;;  %v4236_v3 = vpack.c.bf16 %v1694_v63, %v1693_v61  ;;  %v5489_v14 = vld [vmem:[#allocation2 + $0x51] sm:$0xff]  ;;  %v4112_v15 = vpack.c.bf16 %v518_v5, %v517_v4  ;;  %v5530_v5 = vld [vmem:[#allocation2 + $0x99] sm:$0xff] }
  0xfc   : > { %4221 = vmatprep.subr.bf16.mxu0 %v4220_v12  ;;  %v1696_v13 = vld [vmem:[#allocation10 + $0x2d8] sm:$0xff]  ;;  %v519_v18 = vld [vmem:[#allocation10 + $0x60] sm:$0xff]  ;;  %v5505_v45 = vld [vmem:[%s5351_s19] sm:$0xff] }
  0xfd   : > { %3481 = vmatmul.mubr.f32.vlgmr.msra.gmra.mrb[0].mxu1 %v524_v17  ;;  %v1697_v23 = vld [vmem:[#allocation10 + $0x2e0] sm:$0xff]  ;;  %v1700_v44 = vld [vmem:[#allocation10 + $0x2f8] sm:$0xff]  ;;  %477 = vst [vmem:[#allocation2 + $0xd8] sm:$0xff] %v5505_v45  ;;  %v2049_v57 = vld [vmem:[#allocation10 + $0x388] sm:$0xff]  ;;  %p6000_p1 = scmp.ne.s32.totalorder %s5998_s2, 0 }
  0xfe   : > { %3753 = vmatmul.mubr.f32.vlgmr.msra.gmra.mrb[0].mxu0 %v5379_v32  ;;  %4095 = vmatpush3.bf16.msra.mxu1 %v4092_v8  ;;  %v5486_v8 = vld [vmem:[#allocation2 + $0x49] sm:$0xff]  ;;  %v5497_v25 = vld [vmem:[#allocation2 + $0x61] sm:$0xff]  ;;  %v5525_v4 = vld [vmem:[#allocation2 + $0x91] sm:$0xff] }
  0xff   : > { %4223 = vmatpush3.bf16.msra.mxu0 %v4220_v12  ;;  %3483 = vmatprep.mubr.f32.mxu1 %v525_v21  ;;  %v1695_v12 = vld [vmem:[#allocation10 + $0x2d0] sm:$0xff]  ;;  %v520_v21 = vld [vmem:[#allocation10 + $0x68] sm:$0xff]  ;;  %v959_v52 = vld [vmem:[#allocation10 + $0x100] sm:$0xff]  ;;  %p4819_p7 = pnand %p4818_p0, %p6000_p1 }
 0x100   : > { %3755 = vmatprep.mubr.f32.mxu0 %v5383_v34  ;;  %4097 = vmatprep.subr.bf16.mxu1 %v4096_v22  ;;  %v4240_v17 = vpack.c.bf16 %v1696_v13, %v1695_v12  ;;  %v4116_v26 = vpack.c.bf16 %v520_v21, %v519_v18  ;;  %v2048_v56 = vld [vmem:[#allocation10 + $0x380] sm:$0xff]  ;;  %v5533_v12 = vld [vmem:[%s5351_s19 + $0x8] sm:$0xff] }
 0x101   : > { %3484 = vmatmul.mubr.f32.gmra.mrb[2].mxu1 %v526_v33  ;;  %4225 = vmatprep.subr.bf16.mxu0 %v4224_v24  ;;  %v5500_v33 = vld [vmem:[#allocation2 + $0x69] sm:$0xff]  ;;  %v5517_v61 = vld [vmem:[#allocation2 + $0x81] sm:$0xff]  ;;  %478 = vst [vmem:[#allocation2 + $0xe0] sm:$0xff] %v5533_v12  ;;  %v5549_v18 = vld [vmem:[#allocation2 + $0xb1] sm:$0xff]  ;;  %p4820_p3 = pneg %p4819_p7 }
 0x102   : > { %3756 = vmatmul.mubr.f32.gmra.mrb[2].mxu0 %v5387_v38  ;;  %3486 = vmatprep.mubr.f32.mxu1 %v527_v37  ;;  %v521_v37 = vld [vmem:[#allocation10 + $0x70] sm:$0xff]  ;;  %v5536_v13 = vld [vmem:[#allocation2 + $0xa1] sm:$0xff] }
 0x103   : > { %4099 = vmatpush3.bf16.msra.mxu1 %v4096_v22  ;;  %3758 = vmatprep.mubr.f32.mxu0 %v5391_v41  ;;  %v5494_v22 = vld [vmem:[#allocation2 + $0x59] sm:$0xff] }
 0x104   : > { %4227 = vmatpush3.bf16.msra.mxu0 %v4224_v24  ;;  %4101 = vmatprep.subr.bf16.mxu1 %v4100_v39  ;;  %v1698_v24 = vld [vmem:[#allocation10 + $0x2e8] sm:$0xff]  ;;  %v5554_v21 = vld [vmem:[#allocation2 + $0xb9] sm:$0xff] }
 0x105   : > { %3487 = vmatmul.mubr.f32.gmra.mrb[4].mxu1 %v528_v47  ;;  %4229 = vmatprep.subr.bf16.mxu0 %v4228_v40  ;;  %v4244_v35 = vpack.c.bf16 %v1698_v24, %v1697_v23  ;;  %v5508_v47 = vld [vmem:[#allocation2 + $0x71] sm:$0xff]  ;;  %v5557_v23 = vld [vmem:[#allocation2 + $0x1a] sm:$0xff] }
 0x106   : > { %3759 = vmatmul.mubr.f32.gmra.mrb[4].mxu0 %v5395_v42  ;;  %3489 = vmatprep.mubr.f32.mxu1 %v5474_v53  ;;  %v961_v24 = vld [vmem:[#allocation10 + $0x110] sm:$0xff] }
 0x107   : > { %3761 = vmatprep.mubr.f32.mxu0 %v5398_v43  ;;  %4103 = vmatpush3.bf16.msra.mxu1 %v4100_v39  ;;  %v522_v39 = vld [vmem:[#allocation10 + $0x78] sm:$0xff] }
 0x108   : > { %4231 = vmatpush3.bf16.msra.mxu0 %v4228_v40  ;;  %4105 = vmatprep.subr.bf16.mxu1 %v4104_v54  ;;  %v1699_v40 = vld [vmem:[#allocation10 + $0x2f0] sm:$0xff]  ;;  %v4120_v48 = vpack.c.bf16 %v522_v39, %v521_v37  ;;  %v2051_v37 = vld [vmem:[#allocation10 + $0x398] sm:$0xff] }
 0x109   : > { %3490 = vmatmul.mubr.f32.gmra.mrb[6].mxu1 %v5478_v60  ;;  %4233 = vmatprep.subr.bf16.mxu0 %v4232_v55  ;;  %v4248_v51 = vpack.c.bf16 %v1700_v44, %v1699_v40  ;;  %v963_v44 = vld [vmem:[#allocation10 + $0x120] sm:$0xff] }
 0x10a   : > { %3762 = vmatmul.mubr.f32.gmra.mrb[6].mxu0 %v5403_v46  ;;  %3492 = vmatprep.mubr.f32.mxu1 %v5481_v1 }
 0x10b   : > { %3764 = vmatprep.mubr.f32.mxu0 %v5407_v49  ;;  %4107 = vmatpush3.bf16.msra.mxu1 %v4104_v54  ;;  %v960_v54 = vld [vmem:[#allocation10 + $0x108] sm:$0xff] }
 0x10c   : > { %4235 = vmatpush3.bf16.msra.mxu0 %v4232_v55  ;;  %4109 = vmatprep.subr.bf16.mxu1 %v4108_v2  ;;  %v5514_v55 = vld [vmem:[#allocation2 + $0x79] sm:$0xff]  ;;  %v4124_v63 = vpack.c.bf16 %v960_v54, %v959_v52 }
 0x10d   : > { %3493 = vmatmul.mubr.f32.gmra.mrb[8].mxu1 %v5486_v8  ;;  %4237 = vmatprep.subr.bf16.mxu0 %v4236_v3  ;;  %v5573_v52 = vld [vmem:[#allocation2 + $0x3a] sm:$0xff] }
 0x10e   : > { %3765 = vmatmul.mubr.f32.gmra.mrb[8].mxu0 %v5410_v50  ;;  %3495 = vmatprep.mubr.f32.mxu1 %v5489_v14 }
 0x10f   : > { %3767 = vmatprep.mubr.f32.mxu0 %v5415_v58  ;;  %4111 = vmatpush3.bf16.msra.mxu1 %v4108_v2  ;;  %v4252_v2 = vpack.c.bf16 %v2049_v57, %v2048_v56  ;;  %v965_v56 = vld [vmem:[#allocation10 + $0x130] sm:$0xff]  ;;  %v966_v57 = vld [vmem:[#allocation10 + $0x138] sm:$0xff] }
 0x110   : > { %4239 = vmatpush3.bf16.msra.mxu0 %v4236_v3  ;;  %4113 = vmatprep.subr.bf16.mxu1 %v4112_v15  ;;  %v5522_v3 = vld [vmem:[#allocation2 + $0x89] sm:$0xff] }
 0x111   : > { %3496 = vmatmul.mubr.f32.gmra.mrb[10].mxu1 %v5494_v22  ;;  %4241 = vmatprep.subr.bf16.mxu0 %v4240_v17 }
 0x112   : > { %3768 = vmatmul.mubr.f32.gmra.mrb[10].mxu0 %v5418_v59  ;;  %3498 = vmatprep.mubr.f32.mxu1 %v5497_v25 }
 0x113   : > { %3770 = vmatprep.mubr.f32.mxu0 %v5423_v62  ;;  %4115 = vmatpush3.bf16.msra.mxu1 %v4112_v15  ;;  %v5540_v15 = vld [vmem:[%s5351_s19 + $0x10] sm:$0xff]  ;;  %s2883_s19 = scalar_lea.sflag [#allocation6], %s5332_s14 }
 0x114   : > { %4243 = vmatpush3.bf16.msra.mxu0 %v4240_v17  ;;  %4117 = vmatprep.subr.bf16.mxu1 %v4116_v26  ;;  %479 = vst [vmem:[#allocation2 + $0xe8] sm:$0xff] %v5540_v15  ;;  %v5546_v17 = vld [vmem:[#allocation2 + $0xa9] sm:$0xff] }
 0x115   : > { %3499 = vmatmul.mubr.f32.gmra.mrb[12].mxu1 %v5500_v33  ;;  %4245 = vmatprep.subr.bf16.mxu0 %v4244_v35 }
 0x116   : > { %3771 = vmatmul.mubr.f32.gmra.mrb[12].mxu0 %v5427_v0  ;;  %3501 = vmatprep.mubr.f32.mxu1 %v5508_v47 }
 0x117   : > { %3773 = vmatprep.mubr.f32.mxu0 %v5431_v6  ;;  %4119 = vmatpush3.bf16.msra.mxu1 %v4116_v26  ;;  %v962_v26 = vld [vmem:[#allocation10 + $0x118] sm:$0xff] }
 0x118   : > { %4247 = vmatpush3.bf16.msra.mxu0 %v4244_v35  ;;  %4121 = vmatprep.subr.bf16.mxu1 %v4120_v48  ;;  %v2050_v35 = vld [vmem:[#allocation10 + $0x390] sm:$0xff]  ;;  %v4128_v39 = vpack.c.bf16 %v962_v26, %v961_v24  ;;  %v5581_v24 = vld [vmem:[#allocation2 + $0x4a] sm:$0xff] }
 0x119   : > { %3502 = vmatmul.mubr.f32.gmra.mrb[14].mxu1 %v5514_v55  ;;  %4249 = vmatprep.subr.bf16.mxu0 %v4248_v51  ;;  %v4256_v40 = vpack.c.bf16 %v2051_v37, %v2050_v35  ;;  %v967_v35 = vld [vmem:[#allocation10 + $0x140] sm:$0xff]  ;;  %v968_v37 = vld [vmem:[#allocation10 + $0x148] sm:$0xff] }
 0x11a   : > { %3774 = vmatmul.mubr.f32.gmra.mrb[14].mxu0 %v5434_v7  ;;  %3504 = vmatprep.mubr.f32.mxu1 %v5517_v61 }
 0x11b   : > { %3776 = vmatprep.mubr.f32.mxu0 %v5439_v9  ;;  %4123 = vmatpush3.bf16.msra.mxu1 %v4120_v48  ;;  %v964_v48 = vld [vmem:[#allocation10 + $0x128] sm:$0xff] }
 0x11c   : > { %4251 = vmatpush3.bf16.msra.mxu0 %v4248_v51  ;;  %4125 = vmatprep.subr.bf16.mxu1 %v4124_v63  ;;  %v2053_v51 = vld [vmem:[#allocation10 + $0x3a8] sm:$0xff] }
 0x11d   : > { %3505 = vmatmul.mubr.f32.gmra.mrb[16].mxu1 %v5522_v3  ;;  %4253 = vmatprep.subr.bf16.mxu0 %v4252_v2 }
 0x11e   : > { %3777 = vmatmul.mubr.f32.gmra.mrb[16].mxu0 %v5442_v10  ;;  %3507 = vmatprep.mubr.f32.mxu1 %v5525_v4 }
 0x11f   : > { %3779 = vmatprep.mubr.f32.mxu0 %v5445_v11 }
 0x121   : > { %3508 = vmatmul.mubr.f32.gmra.mrb[18].mxu1 %v5530_v5 }
 0x122   : > { %3780 = vmatmul.mubr.f32.gmra.mrb[18].mxu0 %v5451_v16  ;;  %3510 = vmatprep.mubr.f32.mxu1 %v5536_v13 }
 0x123   : > { %3782 = vmatprep.mubr.f32.mxu0 %v5455_v19 }
 0x125   : > { %3511 = vmatmul.mubr.f32.gmra.mrb[20].mxu1 %v5546_v17 }
 0x126   : > { %3783 = vmatmul.mubr.f32.gmra.mrb[20].mxu0 %v5459_v20  ;;  %3513 = vmatprep.mubr.f32.mxu1 %v5549_v18  ;;  %v5563_v20 = vld [vmem:[#allocation2 + $0x22] sm:$0xff] }
 0x127   : > { %3785 = vmatprep.mubr.f32.mxu0 %v5463_v27  ;;  %v5566_v27 = vld [vmem:[#allocation2 + $0x2a] sm:$0xff] }
 0x129   : > { %3514 = vmatmul.mubr.f32.gmra.mrb[22].mxu1 %v5554_v21 }
 0x12a   : > { %3786 = vmatmul.mubr.f32.gmra.mrb[22].mxu0 %v5468_v36  ;;  %3548 = vmatprep.mubr.f32.mxu1 %v5362_v28  ;;  %v2052_v36 = vld [vmem:[#allocation10 + $0x3a0] sm:$0xff]  ;;  %v5570_v28 = vld [vmem:[#allocation2 + $0x32] sm:$0xff] }
 0x12b   : > { %3820 = vmatprep.mubr.f32.mxu0 %v5557_v23  ;;  %v4260_v54 = vpack.c.bf16 %v2053_v51, %v2052_v36  ;;  %v969_v36 = vld [vmem:[#allocation10 + $0x150] sm:$0xff]  ;;  %v970_v51 = vld [vmem:[#allocation10 + $0x158] sm:$0xff] }
 0x12d   : > { %3549 = vmatmul.mubr.f32.vlgmr.msra.gmra.mrb[0].mxu1 %v5365_v29  ;;  %v4132_v29 = vpack.c.bf16 %v964_v48, %v963_v44  ;;  %v5587_v44 = vld [vmem:[#allocation2 + $0x52] sm:$0xff] }
 0x12e   : > { %3821 = vmatmul.mubr.f32.vlgmr.msra.gmra.mrb[0].mxu0 %v5563_v20  ;;  %4127 = vmatpush3.bf16.msra.mxu1 %v4124_v63  ;;  %v2054_v63 = vld [vmem:[#allocation10 + $0x3b0] sm:$0xff] }
 0x12f   : > { %4255 = vmatpush3.bf16.msra.mxu0 %v4252_v2  ;;  %3551 = vmatprep.mubr.f32.mxu1 %v5372_v31  ;;  %v2055_v31 = vld [vmem:[#allocation10 + $0x3b8] sm:$0xff] }
 0x130   : > { %3823 = vmatprep.mubr.f32.mxu0 %v5566_v27  ;;  %4129 = vmatprep.subr.bf16.mxu1 %v4128_v39  ;;  %v5579_v2 = vld [vmem:[#allocation2 + $0x42] sm:$0xff]  ;;  %v4264_v26 = vpack.c.bf16 %v2055_v31, %v2054_v63  ;;  %v972_v31 = vld [vmem:[#allocation10 + $0x168] sm:$0xff] }
 0x131   : > { %3552 = vmatmul.mubr.f32.gmra.mrb[2].mxu1 %v5369_v30  ;;  %4257 = vmatprep.subr.bf16.mxu0 %v4256_v40  ;;  %v4136_v30 = vpack.c.bf16 %v966_v57, %v965_v56  ;;  %v2059_v56 = vld [vmem:[#allocation10 + $0x3d8] sm:$0xff]  ;;  %v971_v63 = vld [vmem:[#allocation10 + $0x160] sm:$0xff] }
 0x132   : > { %3824 = vmatmul.mubr.f32.gmra.mrb[2].mxu0 %v5570_v28  ;;  %3554 = vmatprep.mubr.f32.mxu1 %v5379_v32  ;;  %v2056_v32 = vld [vmem:[#allocation10 + $0x3c0] sm:$0xff] }
 0x133   : > { %4131 = vmatpush3.bf16.msra.mxu1 %v4128_v39  ;;  %3826 = vmatprep.mubr.f32.mxu0 %v5573_v52  ;;  %v2057_v39 = vld [vmem:[#allocation10 + $0x3c8] sm:$0xff] }
 0x134   : > { %4259 = vmatpush3.bf16.msra.mxu0 %v4256_v40  ;;  %4133 = vmatprep.subr.bf16.mxu1 %v4132_v29  ;;  %v5589_v40 = vld [vmem:[#allocation2 + $0x5a] sm:$0xff]  ;;  %v4268_v48 = vpack.c.bf16 %v2057_v39, %v2056_v32 }
 0x135   : > { %3555 = vmatmul.mubr.f32.gmra.mrb[4].mxu1 %v5383_v34  ;;  %4261 = vmatprep.subr.bf16.mxu0 %v4260_v54  ;;  %v4140_v34 = vpack.c.bf16 %v968_v37, %v967_v35  ;;  %v2061_v35 = vld [vmem:[#allocation10 + $0x3e8] sm:$0xff]  ;;  %v973_v32 = vld [vmem:[#allocation10 + $0x170] sm:$0xff]  ;;  %v974_v39 = vld [vmem:[#allocation10 + $0x178] sm:$0xff] }
 0x136   : > { %3827 = vmatmul.mubr.f32.gmra.mrb[4].mxu0 %v5579_v2  ;;  %3557 = vmatprep.mubr.f32.mxu1 %v5387_v38  ;;  %v2058_v38 = vld [vmem:[#allocation10 + $0x3d0] sm:$0xff] }
 0x137   : > { %3829 = vmatprep.mubr.f32.mxu0 %v5581_v24  ;;  %4135 = vmatpush3.bf16.msra.mxu1 %v4132_v29  ;;  %v5595_v29 = vld [vmem:[#allocation2 + $0x62] sm:$0xff]  ;;  %v4272_v57 = vpack.c.bf16 %v2059_v56, %v2058_v38  ;;  %v1275_v56 = vld [vmem:[#allocation10 + $0x208] sm:$0xff] }
 0x138   : > { %4263 = vmatpush3.bf16.msra.mxu0 %v4260_v54  ;;  %4137 = vmatprep.subr.bf16.mxu1 %v4136_v30  ;;  %v5597_v54 = vld [vmem:[#allocation2 + $0x6a] sm:$0xff] }
 0x139   : > { %3558 = vmatmul.mubr.f32.gmra.mrb[6].mxu1 %v5391_v41  ;;  %4265 = vmatprep.subr.bf16.mxu0 %v4264_v26  ;;  %v4144_v41 = vpack.c.bf16 %v970_v51, %v969_v36  ;;  %v2063_v36 = vld [vmem:[#allocation10 + $0x3f8] sm:$0xff]  ;;  %v1274_v38 = vld [vmem:[#allocation10 + $0x200] sm:$0xff] }
 0x13a   : > { %3830 = vmatmul.mubr.f32.gmra.mrb[6].mxu0 %v5587_v44  ;;  %3560 = vmatprep.mubr.f32.mxu1 %v5395_v42  ;;  %v2060_v42 = vld [vmem:[#allocation10 + $0x3e0] sm:$0xff] }
 0x13b   : > { %3832 = vmatprep.mubr.f32.mxu0 %v5589_v40  ;;  %4139 = vmatpush3.bf16.msra.mxu1 %v4136_v30  ;;  %v5603_v30 = vld [vmem:[#allocation2 + $0x72] sm:$0xff]  ;;  %v4276_v37 = vpack.c.bf16 %v2061_v35, %v2060_v42  ;;  %v5629_v42 = vld [vmem:[#allocation2 + $0xaa] sm:$0xff] }
 0x13c   : > { %4267 = vmatpush3.bf16.msra.mxu0 %v4264_v26  ;;  %4141 = vmatprep.subr.bf16.mxu1 %v4140_v34  ;;  %v5605_v26 = vld [vmem:[#allocation2 + $0x7a] sm:$0xff]  ;;  %v5645_v35 = vld [vmem:[#allocation2 + $0xca] sm:$0xff] }
 0x13d   : > { %3561 = vmatmul.mubr.f32.gmra.mrb[8].mxu1 %v5398_v43  ;;  %4269 = vmatprep.subr.bf16.mxu0 %v4268_v48  ;;  %v4148_v43 = vpack.c.bf16 %v972_v31, %v971_v63  ;;  %v2008_v63 = vld [vmem:[#allocation10 + $0x308] sm:$0xff] }
 0x13e   : > { %3833 = vmatmul.mubr.f32.gmra.mrb[8].mxu0 %v5595_v29  ;;  %3563 = vmatprep.mubr.f32.mxu1 %v5403_v46  ;;  %v2062_v46 = vld [vmem:[#allocation10 + $0x3f0] sm:$0xff] }
 0x13f   : > { %3835 = vmatprep.mubr.f32.mxu0 %v5597_v54  ;;  %4143 = vmatpush3.bf16.msra.mxu1 %v4140_v34  ;;  %v5611_v34 = vld [vmem:[#allocation2 + $0x82] sm:$0xff]  ;;  %v4280_v51 = vpack.c.bf16 %v2063_v36, %v2062_v46 }
 0x140   : > { %4271 = vmatpush3.bf16.msra.mxu0 %v4268_v48  ;;  %4145 = vmatprep.subr.bf16.mxu1 %v4144_v41  ;;  %v5613_v48 = vld [vmem:[#allocation2 + $0x8a] sm:$0xff] }
 0x141   : > { %3564 = vmatmul.mubr.f32.gmra.mrb[10].mxu1 %v5407_v49  ;;  %4273 = vmatprep.subr.bf16.mxu0 %v4272_v57  ;;  %v4152_v49 = vpack.c.bf16 %v974_v39, %v973_v32  ;;  %v2009_v32 = vld [vmem:[#allocation10 + $0x310] sm:$0xff]  ;;  %v2010_v39 = vld [vmem:[#allocation10 + $0x318] sm:$0xff]  ;;  %v1278_v36 = vld [vmem:[#allocation10 + $0x220] sm:$0xff] }
 0x142   : > { %3836 = vmatmul.mubr.f32.gmra.mrb[10].mxu0 %v5603_v30  ;;  %3566 = vmatprep.mubr.f32.mxu1 %v5410_v50  ;;  %v2007_v50 = vld [vmem:[#allocation10 + $0x300] sm:$0xff] }
 0x143   : > { %3838 = vmatprep.mubr.f32.mxu0 %v5605_v26  ;;  %4147 = vmatpush3.bf16.msra.mxu1 %v4144_v41  ;;  %v5619_v41 = vld [vmem:[#allocation2 + $0x92] sm:$0xff]  ;;  %v4284_v31 = vpack.c.bf16 %v2008_v63, %v2007_v50  ;;  %v1281_v50 = vld [vmem:[#allocation10 + $0x238] sm:$0xff] }
 0x144   : > { %4275 = vmatpush3.bf16.msra.mxu0 %v4272_v57  ;;  %4149 = vmatprep.subr.bf16.mxu1 %v4148_v43  ;;  %v5621_v57 = vld [vmem:[#allocation2 + $0x9a] sm:$0xff] }
 0x145   : > { %3567 = vmatmul.mubr.f32.gmra.mrb[12].mxu1 %v5415_v58  ;;  %4277 = vmatprep.subr.bf16.mxu0 %v4276_v37  ;;  %v4156_v58 = vpack.c.bf16 %v1275_v56, %v1274_v38  ;;  %v1280_v56 = vld [vmem:[#allocation10 + $0x230] sm:$0xff]  ;;  %v2014_v63 = vld [vmem:[#allocation10 + $0x338] sm:$0xff] }
 0x146   : > { %3839 = vmatmul.mubr.f32.gmra.mrb[12].mxu0 %v5611_v34  ;;  %3569 = vmatprep.mubr.f32.mxu1 %v5418_v59  ;;  %v5627_v59 = vld [vmem:[#allocation2 + $0xa2] sm:$0xff] }
 0x147   : > { %3841 = vmatprep.mubr.f32.mxu0 %v5613_v48  ;;  %4151 = vmatpush3.bf16.msra.mxu1 %v4148_v43  ;;  %v1277_v43 = vld [vmem:[#allocation10 + $0x218] sm:$0xff] }
 0x148   : > { %4279 = vmatpush3.bf16.msra.mxu0 %v4276_v37  ;;  %4153 = vmatprep.subr.bf16.mxu1 %v4152_v49  ;;  %v935_v37 = vld [vmem:[#allocation2 + $0xa] sm:$0xff] }
 0x149   : > { %3570 = vmatmul.mubr.f32.gmra.mrb[14].mxu1 %v5423_v62  ;;  %4281 = vmatprep.subr.bf16.mxu0 %v4280_v51  ;;  %v5635_v62 = vld [vmem:[#allocation2 + $0xb2] sm:$0xff] }
 0x14a   : > { %3842 = vmatmul.mubr.f32.gmra.mrb[14].mxu0 %v5619_v41  ;;  %3572 = vmatprep.mubr.f32.mxu1 %v5427_v0  ;;  %v5637_v0 = vld [vmem:[#allocation2 + $0xba] sm:$0xff] }
 0x14b   : > { %3844 = vmatprep.mubr.f32.mxu0 %v5621_v57  ;;  %4155 = vmatpush3.bf16.msra.mxu1 %v4152_v49  ;;  %v1279_v49 = vld [vmem:[#allocation10 + $0x228] sm:$0xff] }
 0x14c   : > { %4283 = vmatpush3.bf16.msra.mxu0 %v4280_v51  ;;  %4157 = vmatprep.subr.bf16.mxu1 %v4156_v58  ;;  %v2012_v51 = vld [vmem:[#allocation10 + $0x328] sm:$0xff]  ;;  %v4164_v38 = vpack.c.bf16 %v1279_v49, %v1278_v36  ;;  %v1289_v36 = vld [vmem:[#allocation10 + $0x278] sm:$0xff] }
 0x14d   : > { %3573 = vmatmul.mubr.f32.gmra.mrb[16].mxu1 %v5431_v6  ;;  %4285 = vmatprep.subr.bf16.mxu0 %v4284_v31  ;;  %v5643_v6 = vld [vmem:[#allocation2 + $0xc2] sm:$0xff] }
 0x14e   : > { %3845 = vmatmul.mubr.f32.gmra.mrb[16].mxu0 %v5627_v59  ;;  %3575 = vmatprep.mubr.f32.mxu1 %v5434_v7  ;;  %v5651_v7 = vld [vmem:[#allocation2 + $0xd2] sm:$0xff]  ;;  %v2022_v49 = vld [vmem:[#allocation10 + $0x378] sm:$0xff] }
 0x14f   : > { %3847 = vmatprep.mubr.f32.mxu0 %v5629_v42 }
 0x151   : > { %3576 = vmatmul.mubr.f32.gmra.mrb[18].mxu1 %v5439_v9  ;;  %v934_v9 = vld [vmem:[#allocation2 + $0x2] sm:$0xff] }
 0x152   : > { %3848 = vmatmul.mubr.f32.gmra.mrb[18].mxu0 %v5635_v62  ;;  %3578 = vmatprep.mubr.f32.mxu1 %v5442_v10  ;;  %v1276_v10 = vld [vmem:[#allocation10 + $0x210] sm:$0xff] }
 0x153   : > { %3850 = vmatprep.mubr.f32.mxu0 %v5637_v0  ;;  %v4160_v46 = vpack.c.bf16 %v1277_v43, %v1276_v10  ;;  %v1285_v10 = vld [vmem:[#allocation10 + $0x258] sm:$0xff] }
 0x154   : > { %v2018_v43 = vld [vmem:[#allocation10 + $0x358] sm:$0xff] }
 0x155   : > { %3579 = vmatmul.mubr.f32.gmra.mrb[20].mxu1 %v5445_v11  ;;  %v936_v11 = vld [vmem:[#allocation2 + $0x12] sm:$0xff] }
 0x156   : > { %3851 = vmatmul.mubr.f32.gmra.mrb[20].mxu0 %v5643_v6  ;;  %3581 = vmatprep.mubr.f32.mxu1 %v5451_v16  ;;  %v4288_v16 = vpack.c.bf16 %v2010_v39, %v2009_v32  ;;  %v1286_v32 = vld [vmem:[#allocation10 + $0x260] sm:$0xff]  ;;  %v1287_v39 = vld [vmem:[#allocation10 + $0x268] sm:$0xff] }
 0x157   : > { %3853 = vmatprep.mubr.f32.mxu0 %v5645_v35 }
 0x159   : > { %3582 = vmatmul.mubr.f32.gmra.mrb[22].mxu1 %v5455_v19  ;;  %v2011_v19 = vld [vmem:[#allocation10 + $0x320] sm:$0xff] }
 0x15a   : > { %3854 = vmatmul.mubr.f32.gmra.mrb[22].mxu0 %v5651_v7  ;;  %3616 = vmatprep.mubr.f32.mxu1 %v934_v9  ;;  %v1284_v9 = vld [vmem:[#allocation10 + $0x250] sm:$0xff] }
 0x15b   : > { %3888 = vmatprep.mubr.f32.mxu0 %v5474_v53  ;;  %v4292_v53 = vpack.c.bf16 %v2012_v51, %v2011_v19 }
 0x15d   : > { %3617 = vmatmul.mubr.f32.vlgmr.msra.gmra.mrb[0].mxu1 %v935_v37 }
 0x15e   : > { %3889 = vmatmul.mubr.f32.vlgmr.msra.gmra.mrb[0].mxu0 %v5478_v60  ;;  %4159 = vmatpush3.bf16.msra.mxu1 %v4156_v58  ;;  %v2013_v60 = vld [vmem:[#allocation10 + $0x330] sm:$0xff]  ;;  %v1282_v58 = vld [vmem:[#allocation10 + $0x240] sm:$0xff] }
 0x15f   : > { %4287 = vmatpush3.bf16.msra.mxu0 %v4284_v31  ;;  %3619 = vmatprep.mubr.f32.mxu1 %v936_v11  ;;  %v1283_v31 = vld [vmem:[#allocation10 + $0x248] sm:$0xff] }
 0x160   : > { %3891 = vmatprep.mubr.f32.mxu0 %v5481_v1  ;;  %4161 = vmatprep.subr.bf16.mxu1 %v4160_v46  ;;  %v4168_v1 = vpack.c.bf16 %v1281_v50, %v1280_v56  ;;  %v2020_v11 = vld [vmem:[#allocation10 + $0x368] sm:$0xff]  ;;  %v2044_v50 = vld [vmem:[#allocation2 + $0xd9] sm:$0xff] }
 0x161   : > { %3620 = vmatmul.mubr.f32.gmra.mrb[2].mxu1 %v5557_v23  ;;  %4289 = vmatprep.subr.bf16.mxu0 %v4288_v16  ;;  %v4296_v23 = vpack.c.bf16 %v2014_v63, %v2013_v60  ;;  %v5694_v56 = vld [vmem:[#allocation2 + $0xd1] sm:$0xff]  ;;  %v2045_v60 = vld [vmem:[#allocation2 + $0xe1] sm:$0xff]  ;;  %v2046_v63 = vld [vmem:[#allocation2 + $0xe9] sm:$0xff] }
 0x162   : > { %3892 = vmatmul.mubr.f32.gmra.mrb[2].mxu0 %v5486_v8  ;;  %3622 = vmatprep.mubr.f32.mxu1 %v5563_v20  ;;  %v2015_v8 = vld [vmem:[#allocation10 + $0x340] sm:$0xff]  ;;  %v2016_v20 = vld [vmem:[#allocation10 + $0x348] sm:$0xff] }
 0x163   : > { %4163 = vmatpush3.bf16.msra.mxu1 %v4160_v46  ;;  %3894 = vmatprep.mubr.f32.mxu0 %v5489_v14  ;;  %v4172_v14 = vpack.c.bf16 %v1283_v31, %v1282_v58  ;;  %v2461_v58 = vld [vmem:[#allocation10 + $0x410] sm:$0xff]  ;;  %v2462_v31 = vld [vmem:[#allocation10 + $0x418] sm:$0xff] }
 0x164   : > { %4291 = vmatpush3.bf16.msra.mxu0 %v4288_v16  ;;  %4165 = vmatprep.subr.bf16.mxu1 %v4164_v38  ;;  %v1288_v16 = vld [vmem:[#allocation10 + $0x270] sm:$0xff] }
 0x165   : > { %3623 = vmatmul.mubr.f32.gmra.mrb[4].mxu1 %v5566_v27  ;;  %4293 = vmatprep.subr.bf16.mxu0 %v4292_v53  ;;  %v4300_v27 = vpack.c.bf16 %v2016_v20, %v2015_v8  ;;  %v4184_v19 = vpack.c.bf16 %v1289_v36, %v1288_v16  ;;  %v1250_v8 = vld [vmem:[#allocation2 + $0x21] sm:$0xff]  ;;  %v1983_v20 = vld [vmem:[#allocation2 + $0x38] sm:$0xff]  ;;  %v1255_v16 = vld [vmem:[#allocation2 + $0x49] sm:$0xff] }
 0x166   : > { %3895 = vmatmul.mubr.f32.gmra.mrb[4].mxu0 %v5494_v22  ;;  %3625 = vmatprep.mubr.f32.mxu1 %v5570_v28  ;;  %v2017_v22 = vld [vmem:[#allocation10 + $0x350] sm:$0xff]  ;;  %v1988_v36 = vld [vmem:[#allocation2 + $0x60] sm:$0xff] }
 0x167   : > { %3897 = vmatprep.mubr.f32.mxu0 %v5497_v25  ;;  %4167 = vmatpush3.bf16.msra.mxu1 %v4164_v38  ;;  %v4176_v25 = vpack.c.bf16 %v1285_v10, %v1284_v9  ;;  %v4304_v37 = vpack.c.bf16 %v2018_v43, %v2017_v22  ;;  %v2459_v38 = vld [vmem:[#allocation10 + $0x400] sm:$0xff]  ;;  %v1984_v9 = vld [vmem:[#allocation2 + $0x40] sm:$0xff]  ;;  %v2464_v22 = vld [vmem:[#allocation10 + $0x428] sm:$0xff] }
 0x168   : > { %4295 = vmatpush3.bf16.msra.mxu0 %v4292_v53  ;;  %4169 = vmatprep.subr.bf16.mxu1 %v4168_v1  ;;  %v2460_v53 = vld [vmem:[#allocation10 + $0x408] sm:$0xff]  ;;  %v2463_v10 = vld [vmem:[#allocation10 + $0x420] sm:$0xff] }
 0x169   : > { %3626 = vmatmul.mubr.f32.gmra.mrb[6].mxu1 %v5573_v52  ;;  %4297 = vmatprep.subr.bf16.mxu0 %v4296_v23  ;;  %v1252_v43 = vld [vmem:[#allocation2 + $0x31] sm:$0xff] }
 0x16a   : > { %3898 = vmatmul.mubr.f32.gmra.mrb[6].mxu0 %v5500_v33  ;;  %3628 = vmatprep.mubr.f32.mxu1 %v5579_v2  ;;  %v2019_v33 = vld [vmem:[#allocation10 + $0x360] sm:$0xff] }
 0x16b   : > { %3900 = vmatprep.mubr.f32.mxu0 %v5508_v47  ;;  %4171 = vmatpush3.bf16.msra.mxu1 %v4168_v1  ;;  %v4180_v47 = vpack.c.bf16 %v1287_v39, %v1286_v32  ;;  %v4308_v46 = vpack.c.bf16 %v2020_v11, %v2019_v33  ;;  %v1249_v1 = vld [vmem:[#allocation2 + $0x19] sm:$0xff]  ;;  %v1986_v32 = vld [vmem:[#allocation2 + $0x50] sm:$0xff]  ;;  %v4324_v39 = vpack.c.bf16 %v2464_v22, %v2463_v10 }
 0x16c   : > { %4299 = vmatpush3.bf16.msra.mxu0 %v4296_v23  ;;  %4173 = vmatprep.subr.bf16.mxu1 %v4172_v14  ;;  %v1982_v23 = vld [vmem:[#allocation2 + $0x30] sm:$0xff]  ;;  %v2465_v33 = vld [vmem:[#allocation10 + $0x430] sm:$0xff]  ;;  %v2466_v11 = vld [vmem:[#allocation10 + $0x438] sm:$0xff] }
 0x16d   : > { %3629 = vmatmul.mubr.f32.gmra.mrb[8].mxu1 %v5581_v24  ;;  %4301 = vmatprep.subr.bf16.mxu0 %v4300_v27  ;;  %v1261_v10 = vld [vmem:[#allocation2 + $0x79] sm:$0xff]  ;;  %v1994_v22 = vld [vmem:[#allocation2 + $0x90] sm:$0xff] }
 0x16e   : > { %3901 = vmatmul.mubr.f32.gmra.mrb[8].mxu0 %v5514_v55  ;;  %3631 = vmatprep.mubr.f32.mxu1 %v5587_v44  ;;  %v2021_v55 = vld [vmem:[#allocation10 + $0x370] sm:$0xff] }
 0x16f   : > { %3903 = vmatprep.mubr.f32.mxu0 %v5517_v61  ;;  %4175 = vmatpush3.bf16.msra.mxu1 %v4172_v14  ;;  %v4312_v51 = vpack.c.bf16 %v2022_v49, %v2021_v55  ;;  %v1251_v14 = vld [vmem:[#allocation2 + $0x29] sm:$0xff]  ;;  %v4328_v55 = vpack.c.bf16 %v2466_v11, %v2465_v33  ;;  %v4696_v11 = vld [vmem:[#allocation2 + $0x98] sm:$0xff] }
 0x170   : > { %4303 = vmatpush3.bf16.msra.mxu0 %v4300_v27  ;;  %4177 = vmatprep.subr.bf16.mxu1 %v4176_v25  ;;  %v4320_v27 = vpack.c.bf16 %v2462_v31, %v2461_v58  ;;  %v2467_v49 = vld [vmem:[#allocation10 + $0x440] sm:$0xff]  ;;  %v1992_v31 = vld [vmem:[#allocation2 + $0x80] sm:$0xff] }
 0x171   : > { %3632 = vmatmul.mubr.f32.gmra.mrb[10].mxu1 %v5589_v40  ;;  %4305 = vmatprep.subr.bf16.mxu0 %v4304_v37  ;;  %v1259_v58 = vld [vmem:[#allocation2 + $0x69] sm:$0xff] }
 0x172   : > { %3904 = vmatmul.mubr.f32.gmra.mrb[10].mxu0 %v5522_v3  ;;  %3634 = vmatprep.mubr.f32.mxu1 %v5595_v29  ;;  %v4316_v3 = vpack.c.bf16 %v2460_v53, %v2459_v38  ;;  %v1989_v38 = vld [vmem:[#allocation2 + $0x68] sm:$0xff]  ;;  %v1257_v53 = vld [vmem:[#allocation2 + $0x59] sm:$0xff] }
 0x173   : > { %3906 = vmatprep.mubr.f32.mxu0 %v5525_v4  ;;  %4179 = vmatpush3.bf16.msra.mxu1 %v4176_v25  ;;  %v5686_v4 = vld [vmem:[#allocation2 + $0xc1] sm:$0xff] }
 0x174   : > { %4307 = vmatpush3.bf16.msra.mxu0 %v4304_v37  ;;  %4181 = vmatprep.subr.bf16.mxu1 %v4180_v47  ;;  %v1985_v25 = vld [vmem:[#allocation2 + $0x48] sm:$0xff]  ;;  %v1253_v37 = vld [vmem:[#allocation2 + $0x39] sm:$0xff] }
 0x175   : > { %3635 = vmatmul.mubr.f32.gmra.mrb[12].mxu1 %v5597_v54  ;;  %4309 = vmatprep.subr.bf16.mxu0 %v4308_v46 }
 0x176   : > { %3907 = vmatmul.mubr.f32.gmra.mrb[12].mxu0 %v5530_v5  ;;  %3637 = vmatprep.mubr.f32.mxu1 %v5603_v30  ;;  %v5692_v5 = vld [vmem:[#allocation2 + $0xc9] sm:$0xff] }
 0x177   : > { %3909 = vmatprep.mubr.f32.mxu0 %v5536_v13  ;;  %4183 = vmatpush3.bf16.msra.mxu1 %v4180_v47  ;;  %v1254_v47 = vld [vmem:[#allocation2 + $0x41] sm:$0xff] }
 0x178   : > { %4311 = vmatpush3.bf16.msra.mxu0 %v4308_v46  ;;  %4185 = vmatprep.subr.bf16.mxu1 %v4184_v19  ;;  %v1987_v46 = vld [vmem:[#allocation2 + $0x58] sm:$0xff] }
 0x179   : > { %3638 = vmatmul.mubr.f32.gmra.mrb[14].mxu1 %v5605_v26  ;;  %4313 = vmatprep.subr.bf16.mxu0 %v4312_v51 }
 0x17a   : > { %3910 = vmatmul.mubr.f32.gmra.mrb[14].mxu0 %v5546_v17  ;;  %3640 = vmatprep.mubr.f32.mxu1 %v5611_v34 }
 0x17b   : > { %3912 = vmatprep.mubr.f32.mxu0 %v5549_v18  ;;  %4187 = vmatpush3.bf16.msra.mxu1 %v4184_v19  ;;  %v2468_v19 = vld [vmem:[#allocation10 + $0x448] sm:$0xff] }
 0x17c   : > { %4315 = vmatpush3.bf16.msra.mxu0 %v4312_v51  ;;  %4348 = vmatprep.subr.bf16.mxu1 %v4316_v3  ;;  %v1256_v51 = vld [vmem:[#allocation2 + $0x51] sm:$0xff] }
 0x17d   : > { %3641 = vmatmul.mubr.f32.gmra.mrb[16].mxu1 %v5613_v48  ;;  %4317 = vmatprep.subr.bf16.mxu0 %v4316_v3 }
 0x17e   : > { %3913 = vmatmul.mubr.f32.gmra.mrb[16].mxu0 %v5554_v21  ;;  %3643 = vmatprep.mubr.f32.mxu1 %v5619_v41 }
 0x17f   : > { %3915 = vmatprep.mubr.f32.mxu0 %v5686_v4 }
 0x181   : > { %3644 = vmatmul.mubr.f32.gmra.mrb[18].mxu1 %v5621_v57 }
 0x182   : > { %3916 = vmatmul.mubr.f32.gmra.mrb[18].mxu0 %v5692_v5  ;;  %3646 = vmatprep.mubr.f32.mxu1 %v5627_v59 }
 0x183   : > { %3918 = vmatprep.mubr.f32.mxu0 %v5694_v56 }
 0x185   : > { %3647 = vmatmul.mubr.f32.gmra.mrb[20].mxu1 %v5629_v42 }
 0x186   : > { %3919 = vmatmul.mubr.f32.gmra.mrb[20].mxu0 %v2044_v50  ;;  %3649 = vmatprep.mubr.f32.mxu1 %v5635_v62  ;;  %v4332_v50 = vpack.c.bf16 %v2468_v19, %v2467_v49  ;;  %v4701_v49 = vld [vmem:[#allocation2 + $0xc8] sm:$0xff]  ;;  %v4702_v19 = vld [vmem:[#allocation2 + $0xd0] sm:$0xff] }
 0x187   : > { %3921 = vmatprep.mubr.f32.mxu0 %v2045_v60  ;;  %v2469_v60 = vld [vmem:[#allocation10 + $0x450] sm:$0xff] }
 0x189   : > { %3650 = vmatmul.mubr.f32.gmra.mrb[22].mxu1 %v5637_v0 }
 0x18a   : > { %3922 = vmatmul.mubr.f32.gmra.mrb[22].mxu0 %v2046_v63  ;;  %3684 = vmatprep.mubr.f32.mxu1 %v1249_v1  ;;  %v2470_v63 = vld [vmem:[#allocation10 + $0x458] sm:$0xff] }
 0x18b   : > { %3956 = vmatprep.mubr.f32.mxu0 %v1982_v23  ;;  %v1258_v1 = vld [vmem:[#allocation2 + $0x61] sm:$0xff]  ;;  %v1991_v23 = vld [vmem:[#allocation2 + $0x78] sm:$0xff] }
 0x18d   : > { %3685 = vmatmul.mubr.f32.vlgmr.msra.gmra.mrb[0].mxu1 %v1250_v8  ;;  %v4336_v8 = vpack.c.bf16 %v2470_v63, %v2469_v60 }
 0x18e   : > { %3957 = vmatmul.mubr.f32.vlgmr.msra.gmra.mrb[0].mxu0 %v1983_v20  ;;  %4356 = vmatpush3.bf16.msra.mxu1 %v4316_v3  ;;  %v2471_v20 = vld [vmem:[#allocation10 + $0x460] sm:$0xff] }
 0x18f   : > { %4319 = vmatpush3.bf16.msra.mxu0 %v4316_v3  ;;  %3687 = vmatprep.mubr.f32.mxu1 %v1251_v14  ;;  %v1990_v3 = vld [vmem:[#allocation2 + $0x70] sm:$0xff] }
 0x190   : > { %3959 = vmatprep.mubr.f32.mxu0 %v1984_v9  ;;  %4321 = vmatprep.subr.bf16.mxu0 %v4320_v27  ;;  %v2472_v14 = vld [vmem:[#allocation10 + $0x468] sm:$0xff]  ;;  %v1993_v9 = vld [vmem:[#allocation2 + $0x88] sm:$0xff] }
 0x191   : > { %3688 = vmatmul.mubr.f32.gmra.mrb[2].mxu1 %v1252_v43  ;;  %4349 = vmatprep.subr.bf16.mxu1 %v4320_v27  ;;  %v4340_v43 = vpack.c.bf16 %v2472_v14, %v2471_v20 }
 0x192   : > { %3960 = vmatmul.mubr.f32.gmra.mrb[2].mxu0 %v1985_v25  ;;  %3690 = vmatprep.mubr.f32.mxu1 %v1253_v37  ;;  %v2473_v25 = vld [vmem:[#allocation10 + $0x470] sm:$0xff]  ;;  %v2474_v37 = vld [vmem:[#allocation10 + $0x478] sm:$0xff] }
 0x193   : > { %3962 = vmatprep.mubr.f32.mxu0 %v1986_v32  ;;  %4323 = vmatpush3.bf16.msra.mxu0 %v4320_v27  ;;  %v1263_v32 = vld [vmem:[#allocation2 + $0x89] sm:$0xff]  ;;  %v4344_v33 = vpack.c.bf16 %v2474_v37, %v2473_v25 }
 0x194   : > { %4357 = vmatpush3.bf16.msra.mxu1 %v4320_v27  ;;  %4325 = vmatprep.subr.bf16.mxu0 %v4324_v39  ;;  %v1260_v27 = vld [vmem:[#allocation2 + $0x71] sm:$0xff] }
 0x195   : > { %3691 = vmatmul.mubr.f32.gmra.mrb[4].mxu1 %v1254_v47  ;;  %4350 = vmatprep.subr.bf16.mxu1 %v4324_v39  ;;  %v1264_v47 = vld [vmem:[#allocation2 + $0x91] sm:$0xff] }
 0x196   : > { %3963 = vmatmul.mubr.f32.gmra.mrb[4].mxu0 %v1987_v46  ;;  %3693 = vmatprep.mubr.f32.mxu1 %v1255_v16  ;;  %v1265_v46 = vld [vmem:[#allocation2 + $0x99] sm:$0xff]  ;;  %v4697_v16 = vld [vmem:[#allocation2 + $0xa8] sm:$0xff] }
 0x197   : > { %3965 = vmatprep.mubr.f32.mxu0 %v1988_v36  ;;  %4327 = vmatpush3.bf16.msra.mxu0 %v4324_v39  ;;  %v4698_v36 = vld [vmem:[#allocation2 + $0xb0] sm:$0xff] }
 0x198   : > { %4358 = vmatpush3.bf16.msra.mxu1 %v4324_v39  ;;  %4329 = vmatprep.subr.bf16.mxu0 %v4328_v55  ;;  %v1996_v39 = vld [vmem:[#allocation2 + $0xa0] sm:$0xff] }
 0x199   : > { %3694 = vmatmul.mubr.f32.gmra.mrb[6].mxu1 %v1256_v51  ;;  %4351 = vmatprep.subr.bf16.mxu1 %v4328_v55 }
 0x19a   : > { %3966 = vmatmul.mubr.f32.gmra.mrb[6].mxu0 %v1989_v38  ;;  %3696 = vmatprep.mubr.f32.mxu1 %v1257_v53 }
 0x19b   : > { %3968 = vmatprep.mubr.f32.mxu0 %v1990_v3  ;;  %4331 = vmatpush3.bf16.msra.mxu0 %v4328_v55 }
 0x19c   : > { %4359 = vmatpush3.bf16.msra.mxu1 %v4328_v55  ;;  %4333 = vmatprep.subr.bf16.mxu0 %v4332_v50  ;;  %v4700_v55 = vld [vmem:[#allocation2 + $0xc0] sm:$0xff] }
 0x19d   : > { %3697 = vmatmul.mubr.f32.gmra.mrb[8].mxu1 %v1258_v1  ;;  %4352 = vmatprep.subr.bf16.mxu1 %v4332_v50 }
 0x19e   : > { %3969 = vmatmul.mubr.f32.gmra.mrb[8].mxu0 %v1991_v23  ;;  %3699 = vmatprep.mubr.f32.mxu1 %v1259_v58 }
 0x19f   : > { %3971 = vmatprep.mubr.f32.mxu0 %v1992_v31  ;;  %4335 = vmatpush3.bf16.msra.mxu0 %v4332_v50 }
 0x1a0   : > { %4360 = vmatpush3.bf16.msra.mxu1 %v4332_v50  ;;  %4337 = vmatprep.subr.bf16.mxu0 %v4336_v8 }
 0x1a1   : > { %3700 = vmatmul.mubr.f32.gmra.mrb[10].mxu1 %v1260_v27  ;;  %4353 = vmatprep.subr.bf16.mxu1 %v4336_v8 }
 0x1a2   : > { %3972 = vmatmul.mubr.f32.gmra.mrb[10].mxu0 %v1993_v9  ;;  %3702 = vmatprep.mubr.f32.mxu1 %v1261_v10  ;;  %v5760_v10 = vld [vmem:[%s5994_s3] ss:$0 sm:$0xff]  ;;  %s4821_s3 = sshll.u32 %s4990_s4, 4  ;;  %s4822_s3 = int_to_ptr.vmem [resolvable:$false] %s4821_s3 }
 0x1a3   : > { %3974 = vmatprep.mubr.f32.mxu0 %v1994_v22  ;;  %4339 = vmatpush3.bf16.msra.mxu0 %v4336_v8  ;;  %s4823_s24 = scalar_lea.vmem %s4822_s3, 4096  ;;  %p4824_p6 = scmp.lt.s32.totalorder %s5837_s1, %s4822_s3 }
 0x1a4   : > { %4361 = vmatpush3.bf16.msra.mxu1 %v4336_v8  ;;  %4341 = vmatprep.subr.bf16.mxu0 %v4340_v43  ;;  %p4825_p5 = scmp.lt.s32.totalorder %s4823_s24, %s4817_s11 }
 0x1a5   : > { %3703 = vmatmul.mubr.f32.gmra.mrb[12].mxu1 %v5517_v61  ;;  %4354 = vmatprep.subr.bf16.mxu1 %v4340_v43  ;;  %v4699_v61 = vld [vmem:[#allocation2 + $0xb8] sm:$0xff] }
 0x1a6   : > { %3975 = vmatmul.mubr.f32.gmra.mrb[12].mxu0 %v4696_v11  ;;  %3705 = vmatprep.mubr.f32.mxu1 %v1263_v32  ;;  %p4826_p9 = por %p4825_p5, %p4824_p6 }
 0x1a7   : > { %3977 = vmatprep.mubr.f32.mxu0 %v1996_v39  ;;  %4343 = vmatpush3.bf16.msra.mxu0 %v4340_v43  ;;  %v5765_v39 = vld [vmem:[%s5995_s27] ss:$0 sm:$0xff] }
 0x1a8   : > { %4362 = vmatpush3.bf16.msra.mxu1 %v4340_v43  ;;  %4345 = vmatprep.subr.bf16.mxu0 %v4344_v33  ;;  %p4827_p11 = pnand %p4826_p9, %p4820_p3 }
 0x1a9   : > { %3706 = vmatmul.mubr.f32.gmra.mrb[14].mxu1 %v1264_v47  ;;  %4355 = vmatprep.subr.bf16.mxu1 %v4344_v33 }
 0x1aa   : > { %3978 = vmatmul.mubr.f32.gmra.mrb[14].mxu0 %v4697_v16  ;;  %3708 = vmatprep.mubr.f32.mxu1 %v1265_v46 }
 0x1ab   : > { %3980 = vmatprep.mubr.f32.mxu0 %v4698_v36  ;;  %4347 = vmatpush3.bf16.msra.mxu0 %v4344_v33 }
 0x1ac   : > { %4363 = vmatpush3.bf16.msra.mxu1 %v4344_v33 }
 0x1ad   : > { %3709 = vmatmul.mubr.f32.gmra.mrb[16].mxu1 %v5536_v13  ;;  %v2457_v13 = vld [vmem:[#allocation2 + $0xea] sm:$0xff] }
 0x1ae   : > { %3981 = vmatmul.mubr.f32.gmra.mrb[16].mxu0 %v4699_v61  ;;  %3711 = vmatprep.mubr.f32.mxu1 %v5546_v17 }
 0x1af   : > { %3983 = vmatprep.mubr.f32.mxu0 %v4700_v55 }
 0x1b1   : > { %3712 = vmatmul.mubr.f32.gmra.mrb[18].mxu1 %v5549_v18 }
 0x1b2   : > { %3984 = vmatmul.mubr.f32.gmra.mrb[18].mxu0 %v4701_v49  ;;  %3714 = vmatprep.mubr.f32.mxu1 %v5554_v21 }
 0x1b3   : > { %3986 = vmatprep.mubr.f32.mxu0 %v4702_v19 }
 0x1b5   : > { %3715 = vmatmul.mubr.f32.gmra.mrb[20].mxu1 %v5686_v4 }
 0x1b6   : > { %3987 = vmatmul.mubr.f32.gmra.mrb[20].mxu0 %v5505_v45  ;;  %3717 = vmatprep.mubr.f32.mxu1 %v5692_v5  ;;  %v2455_v45 = vld [vmem:[#allocation2 + $0xda] sm:$0xff] }
 0x1b7   : > { %3989 = vmatprep.mubr.f32.mxu0 %v5533_v12  ;;  %v2456_v12 = vld [vmem:[#allocation2 + $0xe2] sm:$0xff] }
 0x1b9   : > { %3718 = vmatmul.mubr.f32.gmra.mrb[22].mxu1 %v5694_v56 }
 0x1ba   : > { %3990 = vmatmul.mubr.f32.gmra.mrb[22].mxu0 %v5540_v15  ;;  %4042 = vmatprep.mubr.f32.mxu1 %v5619_v41 }
 0x1bb   : > { %4024 = vmatprep.mubr.f32.mxu0 %v5570_v28 }
 0x1bd   : > { %4043 = vmatmul.mubr.f32.vlgmr.msra.gmra.mrb[24].mxu1 %v5621_v57 }
 0x1be   : > { %4025 = vmatmul.mubr.f32.vlgmr.msra.gmra.mrb[0].mxu0 %v5573_v52  ;;  %4045 = vmatprep.mubr.f32.mxu1 %v5627_v59 }
 0x1bf   : > { %4027 = vmatprep.mubr.f32.mxu0 %v5579_v2 }
 0x1c1   : > { %4046 = vmatmul.mubr.f32.gmra.mrb[26].mxu1 %v5629_v42 }
 0x1c2   : > { %4028 = vmatmul.mubr.f32.gmra.mrb[2].mxu0 %v5581_v24  ;;  %4048 = vmatprep.mubr.f32.mxu1 %v5635_v62 }
 0x1c3   : > { %4030 = vmatprep.mubr.f32.mxu0 %v5587_v44 }
 0x1c5   : > { %4049 = vmatmul.mubr.f32.gmra.mrb[28].mxu1 %v5637_v0 }
 0x1c6   : > { %4031 = vmatmul.mubr.f32.gmra.mrb[4].mxu0 %v5589_v40  ;;  %4051 = vmatprep.mubr.f32.mxu1 %v5643_v6 }
 0x1c7   : > { %4033 = vmatprep.mubr.f32.mxu0 %v5595_v29 }
 0x1c9   : > { %4052 = vmatmul.mubr.f32.gmra.mrb[30].mxu1 %v5645_v35 }
 0x1ca   : > { %4034 = vmatmul.mubr.f32.gmra.mrb[6].mxu0 %v5597_v54  ;;  %4054 = vmatprep.mubr.f32.mxu1 %v5651_v7 }
 0x1cb   : > { %4036 = vmatprep.mubr.f32.mxu0 %v5603_v30 }
 0x1cd   : > { %4055 = vmatmul.mubr.f32.gmra.mrb[32].mxu1 %v2455_v45 }
 0x1ce   : > { %4037 = vmatmul.mubr.f32.gmra.mrb[8].mxu0 %v5605_v26  ;;  %4057 = vmatprep.mubr.f32.mxu1 %v2456_v12 }
 0x1cf   : > { %4039 = vmatprep.mubr.f32.mxu0 %v5611_v34 }
 0x1d1   : > { %4058 = vmatmul.mubr.f32.gmra.mrb[34].mxu1 %v2457_v13 }
 0x1d2   : > { %4040 = vmatmul.mubr.f32.gmra.mrb[10].mxu0 %v5613_v48 }
 0x260   : > { %v3686_v15 = vpop.f32.mrb[0].mxu1 }
 0x261   : > { %v1356_v17 = vpop.f32.mrb[1].mxu1 }
 0x264   : > { %v5735_v18 = vpop.f32.mrb[2].mxu1 }
 0x265   : > { %v1366_v21 = vpop.f32.mrb[3].mxu1 }
 0x268   : > { %v3692_v28 = vpop.f32.mrb[4].mxu1 }
 0x269   : > { %v5737_v52 = vpop.f32.mrb[5].mxu1 }
 0x26c   : > { %v5739_v2 = vpop.f32.mrb[6].mxu1 }
 0x26d   : > { %v5741_v24 = vpop.f32.mrb[7].mxu1 }
 0x270   : > { %v5743_v44 = vpop.f32.mrb[8].mxu1 }
 0x271   : > { %v1396_v40 = vpop.f32.mrb[9].mxu1 }
 0x274   : > { %v3701_v29 = vpop.f32.mrb[10].mxu1 }
 0x275   : > { %v5745_v54 = vpop.f32.mrb[11].mxu1 }
 0x278   : > { %v3704_v30 = vpop.f32.mrb[12].mxu1 }
 0x279   : > { %v3976_v26 = vpop.f32.mrb[12].mxu0  ;;  %v1416_v34 = vpop.f32.mrb[13].mxu1 }
 0x27a   : > { %v4372_v48 = vadd.f32 %v3976_v26, %v3704_v30  ;;  %v2375_v41 = vpop.f32.mrb[13].mxu0 }
 0x27b   : > { %v4374_v57 = vadd.f32 %v2375_v41, %v1416_v34 }
 0x27c   : > { %v3707_v59 = vpop.f32.mrb[14].mxu1 }
 0x27d   : > { %v3979_v42 = vpop.f32.mrb[14].mxu0  ;;  %v1426_v62 = vpop.f32.mrb[15].mxu1 }
 0x27e   : > { %v4376_v0 = vadd.f32 %v3979_v42, %v3707_v59  ;;  %v2385_v6 = vpop.f32.mrb[15].mxu0 }
 0x280   : > { %v3710_v35 = vpop.f32.mrb[16].mxu1 }
 0x281   : > { %v3982_v7 = vpop.f32.mrb[16].mxu0  ;;  %v1436_v4 = vpop.f32.mrb[17].mxu1 }
 0x282   : > { %v2395_v5 = vpop.f32.mrb[17].mxu0 }
 0x283   : > { %v5747_v56 = vadd.f32 %v2395_v5, %v1436_v4 }
 0x284   : > { %v3713_v51 = vpop.f32.mrb[18].mxu1 }
 0x285   : > { %v3985_v38 = vpop.f32.mrb[18].mxu0  ;;  %v1446_v53 = vpop.f32.mrb[19].mxu1 }
 0x286   : > { %v5749_v3 = vadd.f32 %v3985_v38, %v3713_v51  ;;  %v2405_v50 = vpop.f32.mrb[19].mxu0 }
 0x287   : > { %v5751_v60 = vadd.f32 %v2405_v50, %v1446_v53 }
 0x288   : > { %v3716_v63 = vpop.f32.mrb[20].mxu1 }
 0x289   : > { %v3988_v1 = vpop.f32.mrb[20].mxu0  ;;  %v1456_v23 = vpop.f32.mrb[21].mxu1 }
 0x28a   : > { %v5753_v58 = vadd.f32 %v3988_v1, %v3716_v63  ;;  %v2415_v31 = vpop.f32.mrb[21].mxu0 }
 0x28c   : > { %v3719_v8 = vpop.f32.mrb[22].mxu1 }
 0x28d   : > { %v3991_v20 = vpop.f32.mrb[22].mxu0  ;;  %v1466_v14 = vpop.f32.mrb[23].mxu1 }
 0x28e   : > { %v2425_v27 = vpop.f32.mrb[23].mxu0 }
 0x28f   : > { %v5755_v9 = vadd.f32 %v2425_v27, %v1466_v14 }
 0x290   : > { %v4044_v22 = vpop.f32.mrb[24].mxu1 }
 0x291   : > { %v4026_v43 = vpop.f32.mrb[0].mxu0  ;;  %v4373_v25 = vadd.f32 %v4372_v48, %v4044_v22  ;;  %v2601_v37 = vpop.f32.mrb[25].mxu1 }
 0x292   : > { %v4364_v32 = vadd.f32 %v4026_v43, %v3686_v15  ;;  %v2541_v33 = vpop.f32.mrb[1].mxu0  ;;  %v4375_v11 = vadd.f32 %v4374_v57, %v2601_v37 }
 0x293   : > { %v2788_v47 = vmul.f32 %v4373_v25, %v5760_v10  ;;  %v4365_v46 = vadd.f32 %v2541_v33, %v1356_v17 }
 0x294   : > { %v2780_v16 = vmul.f32 %v4364_v32, %v5760_v10  ;;  %v2787_v36 = vmul.f32 %v4375_v11, %v5760_v10  ;;  %v4047_v61 = vpop.f32.mrb[26].mxu1 }
 0x295   : > { %v2811_v55 = vadd.f32 %v5765_v39, %v2788_v47  ;;  %v2779_v49 = vmul.f32 %v4365_v46, %v5760_v10  ;;  %v4029_v19 = vpop.f32.mrb[2].mxu0  ;;  %v4377_v45 = vadd.f32 %v4376_v0, %v4047_v61  ;;  %v2611_v12 = vpop.f32.mrb[27].mxu1 }
 0x296   : > { %v2803_v13 = vadd.f32 %v5765_v39, %v2780_v16  ;;  %v2810_v15 = vadd.f32 %v5765_v39, %v2787_v36  ;;  %v4366_v21 = vadd.f32 %v4029_v19, %v5735_v18  ;;  %v2551_v17 = vpop.f32.mrb[3].mxu0 }
 0x297   : > { %vm2827_vm0 = vcmp.ge.f32.partialorder %v2811_v55, 0.0  ;;  %v2843_v28 = vmul.f32 0.01, %v2811_v55  ;;  %v2802_v40 = vadd.f32 %v5765_v39, %v2779_v49  ;;  %v2789_v29 = vmul.f32 %v4377_v45, %v5760_v10 }
 0x298   : > { %vm2819_vm1 = vcmp.ge.f32.partialorder %v2803_v13, 0.0  ;;  %v2835_v30 = vmul.f32 0.01, %v2803_v13  ;;  %vm2826_vm2 = vcmp.ge.f32.partialorder %v2810_v15, 0.0  ;;  %v2842_v26 = vmul.f32 0.01, %v2810_v15 }
 0x299   : > { %v2859_v34 = vsel %vm2827_vm0, %v2811_v55, %v2843_v28  ;;  %vm2818_vm3 = vcmp.ge.f32.partialorder %v2802_v40, 0.0  ;;  %v2834_v48 = vmul.f32 0.01, %v2802_v40  ;;  %v2781_v41 = vmul.f32 %v4366_v21, %v5760_v10  ;;  %v4032_v57 = vpop.f32.mrb[4].mxu0  ;;  %v4050_v59 = vpop.f32.mrb[28].mxu1 }
 0x29a   : > { %v2851_v42 = vsel %vm2819_vm1, %v2803_v13, %v2835_v30  ;;  %2875 = vst [vmem:[%s5779_s22 + $0x48] sm:$0xff] %v2859_v34  ;;  %v2858_v18 = vsel %vm2826_vm2, %v2810_v15, %v2842_v26  ;;  %v2812_v62 = vadd.f32 %v5765_v39, %v2789_v29  ;;  %v2561_v0 = vpop.f32.mrb[5].mxu0  ;;  %v2621_v6 = vpop.f32.mrb[29].mxu1 }
 0x29b   : > { %2867 = vst [vmem:[%s5779_s22 + $0x8] sm:$0xff] %v2851_v42  ;;  %v2850_v35 = vsel %vm2818_vm3, %v2802_v40, %v2834_v48  ;;  %2874 = vst [vmem:[%s5779_s22 + $0x40] sm:$0xff] %v2858_v18  ;;  %v2804_v7 = vadd.f32 %v5765_v39, %v2781_v41  ;;  %v4367_v4 = vadd.f32 %v2561_v0, %v5737_v52 }
 0x29c   : > { %v4379_v5 = vadd.f32 %v5747_v56, %v2621_v6  ;;  %2866 = vst [vmem:[%s5779_s22] sm:$0xff] %v2850_v35  ;;  %vm2828_vm4 = vcmp.ge.f32.partialorder %v2812_v62, 0.0  ;;  %v2844_v51 = vmul.f32 0.01, %v2812_v62  ;;  %v4053_v38 = vpop.f32.mrb[30].mxu1 }
 0x29d   : > { %vm2820_vm5 = vcmp.ge.f32.partialorder %v2804_v7, 0.0  ;;  %v2836_v53 = vmul.f32 0.01, %v2804_v7  ;;  %v2782_v50 = vmul.f32 %v4367_v4, %v5760_v10  ;;  %v4035_v1 = vpop.f32.mrb[6].mxu0  ;;  %v2631_v23 = vpop.f32.mrb[31].mxu1  ;;  %v4381_v52 = vadd.f32 %v5749_v3, %v4053_v38 }
 0x29e   : > { %v2790_v63 = vmul.f32 %v4379_v5, %v5760_v10  ;;  %v2860_v31 = vsel %vm2828_vm4, %v2812_v62, %v2844_v51  ;;  %v4368_v8 = vadd.f32 %v4035_v1, %v5739_v2  ;;  %v2571_v56 = vpop.f32.mrb[7].mxu0  ;;  %v4383_v20 = vadd.f32 %v5751_v60, %v2631_v23 }
 0x29f   : > { %v2852_v14 = vsel %vm2820_vm5, %v2804_v7, %v2836_v53  ;;  %2876 = vst [vmem:[%s5779_s22 + $0x50] sm:$0xff] %v2860_v31  ;;  %v2805_v27 = vadd.f32 %v5765_v39, %v2782_v50  ;;  %v4369_v43 = vadd.f32 %v2571_v56, %v5741_v24  ;;  %v2792_v37 = vmul.f32 %v4381_v52, %v5760_v10 }
 0x2a0   : > { %v2813_v22 = vadd.f32 %v5765_v39, %v2790_v63  ;;  %2868 = vst [vmem:[%s5779_s22 + $0x10] sm:$0xff] %v2852_v14  ;;  %v2784_v25 = vmul.f32 %v4368_v8, %v5760_v10  ;;  %v2791_v2 = vmul.f32 %v4383_v20, %v5760_v10  ;;  %v4056_v32 = vpop.f32.mrb[32].mxu1 }
 0x2a1   : > { %vm2821_vm6 = vcmp.ge.f32.partialorder %v2805_v27, 0.0  ;;  %v2837_v3 = vmul.f32 0.01, %v2805_v27  ;;  %v2815_v11 = vadd.f32 %v5765_v39, %v2792_v37  ;;  %v2783_v24 = vmul.f32 %v4369_v43, %v5760_v10  ;;  %v4038_v46 = vpop.f32.mrb[8].mxu0  ;;  %v2641_v16 = vpop.f32.mrb[33].mxu1 }
 0x2a2   : > { %vm2829_vm7 = vcmp.ge.f32.partialorder %v2813_v22, 0.0  ;;  %v2845_v60 = vmul.f32 0.01, %v2813_v22  ;;  %v2807_v33 = vadd.f32 %v5765_v39, %v2784_v25  ;;  %v2814_v47 = vadd.f32 %v5765_v39, %v2791_v2  ;;  %v2581_v19 = vpop.f32.mrb[9].mxu0 }
 0x2a3   : > { %v2853_v36 = vsel %vm2821_vm6, %v2805_v27, %v2837_v3  ;;  %v4370_v55 = vadd.f32 %v4038_v46, %v5743_v44  ;;  %v4385_v49 = vadd.f32 %v5753_v58, %v4056_v32  ;;  %vm2831_vm9 = vcmp.ge.f32.partialorder %v2815_v11, 0.0 }
 0x2a4   : > { %v2861_v61 = vsel %vm2829_vm7, %v2813_v22, %v2845_v60  ;;  %2869 = vst [vmem:[%s5779_s22 + $0x18] sm:$0xff] %v2853_v36  ;;  %vm2823_vm8 = vcmp.ge.f32.partialorder %v2807_v33, 0.0  ;;  %v2839_v45 = vmul.f32 0.01, %v2807_v33  ;;  %v2847_v12 = vmul.f32 0.01, %v2815_v11 }
 0x2a5   : > { %2877 = vst [vmem:[%s5779_s22 + $0x58] sm:$0xff] %v2861_v61  ;;  %v2806_v13 = vadd.f32 %v5765_v39, %v2783_v24  ;;  %vm2830_vm10 = vcmp.ge.f32.partialorder %v2814_v47, 0.0  ;;  %v2846_v15 = vmul.f32 0.01, %v2814_v47  ;;  %v2785_v44 = vmul.f32 %v4370_v55, %v5760_v10  ;;  %v4041_v21 = vpop.f32.mrb[10].mxu0  ;;  %v4059_v17 = vpop.f32.mrb[34].mxu1 }
 0x2a6   : > { %v2855_v58 = vsel %vm2823_vm8, %v2807_v33, %v2839_v45  ;;  %v2863_v28 = vsel %vm2831_vm9, %v2815_v11, %v2847_v12  ;;  %v2793_v40 = vmul.f32 %v4385_v49, %v5760_v10  ;;  %v2591_v29 = vpop.f32.mrb[11].mxu0  ;;  %v2651_v30 = vpop.f32.mrb[35].mxu1 }
 0x2a7   : > { %2871 = vst [vmem:[%s5779_s22 + $0x28] sm:$0xff] %v2855_v58  ;;  %2879 = vst [vmem:[%s5779_s22 + $0x68] sm:$0xff] %v2863_v28  ;;  %vm2822_vm11 = vcmp.ge.f32.partialorder %v2806_v13, 0.0  ;;  %v2838_v26 = vmul.f32 0.01, %v2806_v13  ;;  %v2862_v34 = vsel %vm2830_vm10, %v2814_v47, %v2846_v15  ;;  %v2808_v48 = vadd.f32 %v5765_v39, %v2785_v44 }
 0x2a8   : > { %2878 = vst [vmem:[%s5779_s22 + $0x60] sm:$0xff] %v2862_v34  ;;  %v2816_v41 = vadd.f32 %v5765_v39, %v2793_v40  ;;  %v4371_v57 = vadd.f32 %v2591_v29, %v5745_v54  ;;  %v4387_v59 = vadd.f32 %v5755_v9, %v2651_v30 }
 0x2a9   : > { %v2854_v42 = vsel %vm2822_vm11, %v2806_v13, %v2838_v26  ;;  %vm2824_vm12 = vcmp.ge.f32.partialorder %v2808_v48, 0.0  ;;  %v2840_v18 = vmul.f32 0.01, %v2808_v48 }
 0x2aa   : > { %2870 = vst [vmem:[%s5779_s22 + $0x20] sm:$0xff] %v2854_v42  ;;  %vm2832_vm13 = vcmp.ge.f32.partialorder %v2816_v41, 0.0  ;;  %v2848_v62 = vmul.f32 0.01, %v2816_v41  ;;  %v2786_v0 = vmul.f32 %v4371_v57, %v5760_v10  ;;  %v2794_v6 = vmul.f32 %v4387_v59, %v5760_v10 }
 0x2ab   : > { %v2856_v35 = vsel %vm2824_vm12, %v2808_v48, %v2840_v18 }
 0x2ac   : > { %2872 = vst [vmem:[%s5779_s22 + $0x30] sm:$0xff] %v2856_v35  ;;  %v2864_v54 = vsel %vm2832_vm13, %v2816_v41, %v2848_v62  ;;  %v2809_v9 = vadd.f32 %v5765_v39, %v2786_v0  ;;  %v2817_v7 = vadd.f32 %v5765_v39, %v2794_v6 }
 0x2ad   : > { %2880 = vst [vmem:[%s5779_s22 + $0x70] sm:$0xff] %v2864_v54 }
 0x2ae   : > { %vm2825_vm14 = vcmp.ge.f32.partialorder %v2809_v9, 0.0  ;;  %v2841_v4 = vmul.f32 0.01, %v2809_v9  ;;  %vm2833_vm15 = vcmp.ge.f32.partialorder %v2817_v7, 0.0  ;;  %v2849_v5 = vmul.f32 0.01, %v2817_v7 }
 0x2b0   : > { %v2857_v10 = vsel %vm2825_vm14, %v2809_v9, %v2841_v4  ;;  %v2865_v51 = vsel %vm2833_vm15, %v2817_v7, %v2849_v5 }
 0x2b1   : > { %2873 = vst [vmem:[%s5779_s22 + $0x38] sm:$0xff] %v2857_v10  ;;  %2881 = vst [vmem:[%s5779_s22 + $0x78] sm:$0xff] %v2865_v51 }
 0x2b2   : > { %4830 = shalt.err (!%p4827_p11)
}
 0x2b3   : > { %s4831_s7 = scalar_lea.hbm %s5835_s21, 2048  ;;  %s4835_s22 = scalar_lea.hbm %s5999_s18, 8192 }
 0x2b4   : > { %p4832_p10 = scmp.ne.s32.totalorder %s5835_s21, %s4831_s7  ;;  %p4836_p8 = scmp.lt.u32.totalorder %s5835_s21, %s5999_s18 }
 0x2b5   : > { %p4837_p13 = scmp.lt.u32.totalorder %s4835_s22, %s4831_s7  ;;  %p4839_p0 = scmp.lt.u32.totalorder %s4831_s7, %s5835_s21 }
 0x2b6   : > { %p4833_p4 = pnand %p4832_p10, %p6000_p1 }
 0x2b7   : > { %p4838_p2 = por %p4837_p13, %p4836_p8 }
 0x2b8   : > { %p4834_p12 = pneg %p4833_p4 }
 0x2b9   : > { %p4840_p7 = por %p4839_p0, %p4838_p2 }
 0x2bb   : > { %p4841_p3 = pnand %p4840_p7, %p4834_p12 }
 0x2bd   : > { %4844 = shalt.err (!%p4841_p3)
}
 0x2be   : > { %s4991_s15 = smov 128   ;;  %s4992_s16 = smov 8  }
 0x2bf   : > { %4561 = dma.vmem_to_hbm [thread:$0]  (%p6000_p1), %s5837_s1, 2048, %s5835_s21, %s2883_s19, %s4991_s15, %s4991_s15, %s4992_s16  }
 0x2c0 PF: > { %s6001_s30 = sld [smem:[#allocation19_spill]]  ;;  %s6002_s29 = sld [smem:[#allocation30_spill]] }
 0x2c1   : > { %p4573_p6 = scmp.ge.s32.totalorder %s4977_s10, 2 }
 0x2c6   : > { %s2914_s20 = sand.u32 1, %s6001_s30   ;;  %p6003_p5 = scmp.ne.s32.totalorder %s6002_s29, 0 }
 0x2c7   : > { %s2915_s5 = scalar_lea.sflag [#allocation6], %s2914_s20 }
 0x2c8   : > { %p4568_p9 = pnand %p4573_p6, %p6003_p5 }
 0x2ca   : > { %4918 = dma.done.wait (!%p4568_p9), %s2915_s5, 2048  }
 0x2cb   : > { %4920 = vsyncadd (!%p4568_p9), %s2915_s5, 4294965248  ;;  %s26_s10 = sadd.s32 1, %s4977_s10   ;;  %s6005_s21 = sld [smem:[#allocation18_spill]] }
 0x2cc   : > { %p5870_p11 = scmp.ge.s32.totalorder %s26_s10, 6   ;;  %s6006_s14 = sld [smem:[#allocation28_spill]] }
 0x2cd   : > { %s6007_s1 = sld [smem:[#allocation26_spill]]  ;;  %s6008_s2 = sld [smem:[#allocation20_spill]] }
 0x2ce   : > { %s6009_s29 = sld [smem:[#allocation25_spill]]  ;;  %s6010_s19 = sld [smem:[#allocation23_spill]] }
 0x2cf   : > { %s6011_s4 = sld [smem:[#allocation24_spill]]  ;;  %s6012_s22 = smov %s4933_s23 }
 0x2d0   : > { %s6014_s24 = smov %s4941_s25  ;;  %s6015_s25 = smov %s4945_s26 }
 0x2d1   : > { %s6017_s27 = smov %s4953_s28  ;;  %s6019_s30 = smov %s4969_s8 }
 0x2d2   : > { %s6013_s23 = smov %s6006_s14  ;;  %s6020_s7 = smov %s4973_s9 }
 0x2d3   : > { %s6016_s26 = smov %s6007_s1  ;;  %s6018_s28 = smov %s6008_s2 }
 0x2d4   : > { %s6021_s8 = smov %s6010_s19  ;;  %25 = sbr.rel (!%p5870_p11) target bundleno = 21 (0x15), region = 125 }
 0x2d5   : > { %s6022_s9 = smov %s6011_s4 }
 0x2db   :  { %2920 = vsyncpa [#allocation5], 1 }
 0x2dc   :  { %2922 = vsyncpa [#allocation5 + $0x1], 1 }
 0x2dd   :  { %2923 = vsyncpa [#allocation8], 1 }
 0x2de   :  { %2925 = vsyncpa [#allocation8 + $0x1], 1 }
 0x2df   :  { %2926 = vsyncpa [#allocation11], 1 }
 0x2e0   :  { %2927 = vsyncpa [#allocation6], 1 }
 0x2e1   :  { %2929 = vsyncpa [#allocation6 + $0x1], 1 }

</bundles_post_ra>
